<compile_context>
chip_gen: v7x
topology: tpu7x:2x2x1
jax: 0.10.0
libtpu: 0.0.40
codegen_flags: <defaults>
</compile_context>

<pallas_src>
import functools

import jax
import jax.numpy as jnp
from jax.experimental import pallas as pl
from jax.experimental.pallas import tpu as pltpu


# ----------------------------- helpers -----------------------------

def _vmem_limit_bytes():
    # ~75% of physical VMEM: 48 MiB on v7x (64 MiB phys), 96 MiB on v5e/v6e.
    try:
        cap = pltpu.get_tpu_info().vmem_capacity_bytes
    except Exception:
        cap = 64 * 1024 * 1024
    return int(cap * 3 // 4)


def _cparams(sem):
    return pltpu.CompilerParams(dimension_semantics=sem,
                                vmem_limit_bytes=_vmem_limit_bytes())


def _layernorm(x, gamma, beta, eps=1e-5):
    # x, gamma, beta in f32
    mu = jnp.mean(x, axis=-1, keepdims=True)
    var = jnp.mean(jnp.square(x - mu), axis=-1, keepdims=True)
    return (x - mu) * jax.lax.rsqrt(var + eps) * gamma + beta


# ----------------------------- kernels -----------------------------

def gpt2_stack_kernel(bias_ref, x_ref,
                      wqkv_ref, bqkv_ref, wo_ref, bo_ref, g1_ref, beta1_ref,
                      w1_ref, b1_ref, w2_ref, b2_ref, g2_ref, beta2_ref,
                      gf_ref, betaf_ref,
                      o_ref, resid, *, n_heads):
    """One fused transformer layer per grid step; grid = (batch, layer)."""
    l = pl.program_id(1)

    @pl.when(l == 0)
    def _():
        resid[...] = x_ref[0]                # load this batch element's residual

    x_bf = resid[...]                        # (S, D) bf16 residual stream
    S, D = x_bf.shape
    H = n_heads
    dh = D // H
    scale = 1.0 / (dh ** 0.5)

    # ---- fused QKV projection (bf16 operands, f32 accumulation) ----
    qkv = jnp.dot(x_bf, wqkv_ref[0],
                  preferred_element_type=jnp.float32) + bqkv_ref[0]       # (S, 3D)
    q = (qkv[:, :D] * scale).astype(jnp.bfloat16)   # scale folded into q (SxDh work)
    k = qkv[:, D:2 * D].astype(jnp.bfloat16)
    v = qkv[:, 2 * D:].astype(jnp.bfloat16)

    bias = bias_ref[...]                     # (S, S) additive causal bias, f32

    # ---- causal attention: heads split in-kernel, ctx rebuilt lane-dense ----
    ctx_heads = []
    for h in range(H):                       # static unroll, H is small
        sl = slice(h * dh, (h + 1) * dh)
        qh, kh, vh = q[:, sl], k[:, sl], v[:, sl]
        s = jax.lax.dot_general(qh, kh, (((1,), (1,)), ((), ())),
                                preferred_element_type=jnp.float32)       # (S, S)
        s = s + bias
        s = s - jnp.max(s, axis=-1, keepdims=True)
        p = jnp.exp(s)
        denom = jnp.sum(p, axis=-1, keepdims=True)                        # (S, 1)
        ctx_h = jnp.dot(p.astype(jnp.bfloat16), vh,
                        preferred_element_type=jnp.float32)               # (S, dh)
        # normalize after the PV matmul: S*dh multiplies instead of S*S
        ctx_heads.append(ctx_h * pl.reciprocal(denom, approx=True))
    ctx = jnp.concatenate(ctx_heads, axis=-1).astype(jnp.bfloat16)        # (S, D)

    # ---- attention output projection + residual + LN1 (post-LN) ----
    attn_out = jnp.dot(ctx, wo_ref[0],
                       preferred_element_type=jnp.float32) + bo_ref[0]
    x1 = _layernorm(x_bf.astype(jnp.float32) + attn_out, g1_ref[0], beta1_ref[0])
    x1_bf = x1.astype(jnp.bfloat16)

    # ---- MLP (ReLU) + residual + LN2 (post-LN) ----
    hdn = jnp.dot(x1_bf, w1_ref[0],
                  preferred_element_type=jnp.float32) + b1_ref[0]
    hdn = jnp.maximum(hdn, 0.0).astype(jnp.bfloat16)
    ff = jnp.dot(hdn, w2_ref[0],
                 preferred_element_type=jnp.float32) + b2_ref[0]
    x2 = _layernorm(x1 + ff, g2_ref[0], beta2_ref[0])

    resid[...] = x2.astype(jnp.bfloat16)

    # ---- final LayerNorm (ln_f) folded into the last layer step ----
    @pl.when(l == pl.num_programs(1) - 1)
    def _():
        o_ref[0] = _layernorm(x2, gf_ref[...], betaf_ref[...]).astype(jnp.bfloat16)


def unembed_kernel(x_ref, wu_ref, o_ref):
    # pure matmul; ln_f was already applied in the layer-stack kernel
    o_ref[...] = jnp.dot(x_ref[...], wu_ref[...],
                         preferred_element_type=jnp.float32)


# ----------------------------- wrappers -----------------------------

def run_gpt2_stack(x, bias, stacked, g_f, beta_f, n_heads):
    B, S, D = x.shape
    L = stacked["wqkv"].shape[0]

    def layer_spec(a):
        # one layer's slab per grid step: block (1, ...) indexed by layer
        return pl.BlockSpec((1,) + a.shape[1:],
                            lambda b, l, _nd=a.ndim: (l,) + (0,) * (_nd - 1))

    def const_spec(a):
        return pl.BlockSpec(a.shape, lambda b, l, _nd=a.ndim: (0,) * _nd)

    io_spec = pl.BlockSpec((1, S, D), lambda b, l: (b, 0, 0))

    w_order = ["wqkv", "bqkv", "wo", "bo", "g1", "beta1",
               "w1", "b1", "w2", "b2", "g2", "beta2"]

    return pl.pallas_call(
        functools.partial(gpt2_stack_kernel, n_heads=n_heads),
        out_shape=jax.ShapeDtypeStruct((B, S, D), jnp.bfloat16),
        grid=(B, L),
        in_specs=[const_spec(bias), io_spec]
                 + [layer_spec(stacked[k]) for k in w_order]
                 + [const_spec(g_f), const_spec(beta_f)],
        out_specs=io_spec,
        scratch_shapes=[pltpu.VMEM((S, D), jnp.bfloat16)],   # residual stream
        compiler_params=_cparams(("parallel", "arbitrary")),
    )(bias, x, *[stacked[k] for k in w_order], g_f, beta_f)


def run_unembed(x2d, wu):
    R, D = x2d.shape
    V = wu.shape[1]
    tile_r = R if R <= 256 else 256
    assert R % tile_r == 0
    tile_v = 128
    # grow the vocab tile (amortize per-step overhead) while keeping >=2 grid
    # steps along the parallel vocab axis so both v7x TensorCores get work
    while tile_v * 2 <= 1024 and V % (tile_v * 2) == 0 and V // (tile_v * 2) >= 2:
        tile_v *= 2
    assert V % tile_v == 0
    return pl.pallas_call(
        unembed_kernel,
        out_shape=jax.ShapeDtypeStruct((R, V), jnp.float32),
        # vocab is the OUTER axis: W_U streams from HBM exactly once; only the
        # small x row-tile is re-fetched per vocab tile
        grid=(V // tile_v, R // tile_r),
        in_specs=[pl.BlockSpec((tile_r, D), lambda j, i: (i, 0)),
                  pl.BlockSpec((D, tile_v), lambda j, i: (0, j))],
        out_specs=pl.BlockSpec((tile_r, tile_v), lambda j, i: (i, j)),
        compiler_params=_cparams(("parallel", "parallel")),
    )(x2d, wu)


# ----------------------------- full model -----------------------------

def gpt2_forward(tokens, params, n_heads):
    B, S = tokens.shape
    D = params["W_E"].shape[1]

    # embedding gather is layout glue (plain JAX); residual stream travels bf16
    x = (params["W_E"][tokens] + params["W_pos"][:S][None, :, :]).astype(jnp.bfloat16)

    # additive causal bias (torch.triu(ones, diagonal=1) positions disallowed),
    # built once and passed into the kernel instead of rebuilt every grid step
    row = jax.lax.broadcasted_iota(jnp.int32, (S, S), 0)
    col = jax.lax.broadcasted_iota(jnp.int32, (S, S), 1)
    bias = jnp.where(col > row, jnp.float32(-1e30), jnp.float32(0.0))

    y = run_gpt2_stack(x, bias, params["stacked"], params["g_f"],
                       params["beta_f"], n_heads)           # (B, S, D), post ln_f
    logits2d = run_unembed(y.reshape(B * S, D), params["W_U"])
    return logits2d.reshape(B, S, -1)


def init_params(key, d_vocab, seq_len, d_model, d_mlp, n_layers):
    std = 0.02
    kE, kP, kqkv, ko, k1, k2, kU = jax.random.split(key, 7)
    L, D, M = n_layers, d_model, d_mlp

    def nrm(k, shape, dtype=jnp.bfloat16):
        return (std * jax.random.normal(k, shape, dtype=jnp.float32)).astype(dtype)

    return {
        "W_E": nrm(kE, (d_vocab, D), jnp.float32),
        "W_pos": nrm(kP, (seq_len, D), jnp.float32),
        "g_f": jnp.ones((1, D), jnp.float32),
        "beta_f": jnp.zeros((1, D), jnp.float32),
        # unembed: nn.Linear(d_model, d_vocab, bias=False), stored as (D, V)
        "W_U": nrm(kU, (D, d_vocab)),
        "stacked": {
            # per-layer weights stacked on a leading layer axis; matmul weights
            # stored bf16 (halves weight DMA), biases / LN params f32
            "wqkv": nrm(kqkv, (L, D, 3 * D)),
            "bqkv": jnp.zeros((L, 1, 3 * D), jnp.float32),
            "wo": nrm(ko, (L, D, D)),
            "bo": jnp.zeros((L, 1, D), jnp.float32),
            "g1": jnp.ones((L, 1, D), jnp.float32),
            "beta1": jnp.zeros((L, 1, D), jnp.float32),
            "w1": nrm(k1, (L, D, M)),
            "b1": jnp.zeros((L, 1, M), jnp.float32),
            "w2": nrm(k2, (L, M, D)),
            "b2": jnp.zeros((L, 1, D), jnp.float32),
            "g2": jnp.ones((L, 1, D), jnp.float32),
            "beta2": jnp.zeros((L, 1, D), jnp.float32),
        },
    }


# TODO(synk): GPT2TokenizerFast (encode/decode/yap sampling loop) has no Pallas
# equivalent; only the tensor forward pass is implemented.

if __name__ == "__main__":
    # small, lane-friendly synthetic config: d_model=128, n_heads=4 (dh=32),
    # d_mlp=512, n_layers=2, d_vocab=256, max seq_len=32; batch=2, seq=16
    d_model, n_heads, d_mlp = 128, 4, 512
    n_layers, d_vocab, max_seq = 2, 256, 32
    batch, seq = 2, 16

    key = jax.random.PRNGKey(0)
    kp, kt = jax.random.split(key)
    params = init_params(kp, d_vocab, max_seq, d_model, d_mlp, n_layers)
    tokens = jax.random.randint(kt, (batch, seq), 0, d_vocab, dtype=jnp.int32)

    fwd = jax.jit(functools.partial(gpt2_forward, n_heads=n_heads))
    logits = fwd(tokens, params)
    jax.block_until_ready(logits)
    assert logits.shape == (batch, seq, d_vocab)
    assert bool(jnp.all(jnp.isfinite(logits)))
    print("KERNEL_OK")
</pallas_src>

<mosaic_0001>
module attributes {stable_mosaic.version = 11 : i64} {
  func.func @unembed_kernel(%arg0: i32, %arg1: i32, %arg2: memref<32x128xbf16, #tpu.memory_space<vmem>>, %arg3: memref<128x128xbf16, #tpu.memory_space<vmem>>, %arg4: memref<32x128xf32, #tpu.memory_space<vmem>>) attributes {dimension_semantics = [#tpu.dimension_semantics<parallel>, #tpu.dimension_semantics<parallel>], iteration_bounds = array<i64: 2, 1>, scalar_prefetch = 0 : i64, scratch_operands = 0 : i64, tpu.core_type = #tpu.core_type<tc>, window_params = [{transform_indices = @transform_0, window_bounds = array<i64: 32, 128>}, {transform_indices = @transform_1, window_bounds = array<i64: 128, 128>}, {transform_indices = @transform_2, window_bounds = array<i64: 32, 128>}]} {
    %c0 = arith.constant 0 : index
    %c0_0 = arith.constant 0 : index
    %0 = vector.load %arg2[%c0, %c0_0] : memref<32x128xbf16, #tpu.memory_space<vmem>>, vector<32x128xbf16>
    %c0_1 = arith.constant 0 : index
    %c0_2 = arith.constant 0 : index
    %1 = vector.load %arg3[%c0_1, %c0_2] : memref<128x128xbf16, #tpu.memory_space<vmem>>, vector<128x128xbf16>
    %cst = arith.constant dense<0.000000e+00> : vector<32x128xf32>
    %2 = tpu.matmul %0, %1, %cst {dimension_numbers = #tpu.dot_dimension_numbers<[1], [0], [0], [1], [0, 0, 1, 1], [], []>} : vector<32x128xbf16>, vector<128x128xbf16>, vector<32x128xf32> -> vector<32x128xf32>
    %c0_3 = arith.constant 0 : index
    %c0_4 = arith.constant 0 : index
    %3 = vector.load %arg4[%c0_3, %c0_4] : memref<32x128xf32, #tpu.memory_space<vmem>>, vector<32x128xf32>
    tpu.vector_store %arg4[%c0_3, %c0_4], %2 {strides = array<i32>} : memref<32x128xf32, #tpu.memory_space<vmem>>, vector<32x128xf32>,
    return
  }
  func.func @transform_0(%arg0: i32, %arg1: i32) -> (i32, i32) {
    %c0_i32 = arith.constant 0 : i32
    %c0_i32_0 = arith.constant 0 : i32
    return %arg1, %c0_i32 : i32, i32
  }
  func.func @transform_1(%arg0: i32, %arg1: i32) -> (i32, i32) {
    %c0_i32 = arith.constant 0 : i32
    %c0_i32_0 = arith.constant 0 : i32
    return %c0_i32, %arg0 : i32, i32
  }
  func.func @transform_2(%arg0: i32, %arg1: i32) -> (i32, i32) {
    %c0_i32 = arith.constant 0 : i32
    return %arg1, %arg0 : i32, i32
  }
}

module attributes {stable_mosaic.version = 11 : i64} {
  func.func @gpt2_stack_kernel(%arg0: i32, %arg1: i32, %arg2: memref<16x16xf32, #tpu.memory_space<vmem>>, %arg3: memref<1x16x128xbf16, #tpu.memory_space<vmem>>, %arg4: memref<1x128x384xbf16, #tpu.memory_space<vmem>>, %arg5: memref<1x1x384xf32, #tpu.memory_space<vmem>>, %arg6: memref<1x128x128xbf16, #tpu.memory_space<vmem>>, %arg7: memref<1x1x128xf32, #tpu.memory_space<vmem>>, %arg8: memref<1x1x128xf32, #tpu.memory_space<vmem>>, %arg9: memref<1x1x128xf32, #tpu.memory_space<vmem>>, %arg10: memref<1x128x512xbf16, #tpu.memory_space<vmem>>, %arg11: memref<1x1x512xf32, #tpu.memory_space<vmem>>, %arg12: memref<1x512x128xbf16, #tpu.memory_space<vmem>>, %arg13: memref<1x1x128xf32, #tpu.memory_space<vmem>>, %arg14: memref<1x1x128xf32, #tpu.memory_space<vmem>>, %arg15: memref<1x1x128xf32, #tpu.memory_space<vmem>>, %arg16: memref<1x128xf32, #tpu.memory_space<vmem>>, %arg17: memref<1x128xf32, #tpu.memory_space<vmem>>, %arg18: memref<1x16x128xbf16, #tpu.memory_space<vmem>>, %arg19: memref<16x128xbf16, #tpu.memory_space<vmem>>) attributes {dimension_semantics = [#tpu.dimension_semantics<parallel>, #tpu.dimension_semantics<arbitrary>], iteration_bounds = array<i64: 2, 2>, scalar_prefetch = 0 : i64, scratch_operands = 1 : i64, tpu.core_type = #tpu.core_type<tc>, window_params = [{pipeline_mode = #tpu.pipeline_mode<synchronous>, transform_indices = @transform_0, window_bounds = array<i64: 16, 16>}, {transform_indices = @transform_1, window_bounds = array<i64: 1, 16, 128>}, {transform_indices = @transform_2, window_bounds = array<i64: 1, 128, 384>}, {transform_indices = @transform_3, window_bounds = array<i64: 1, 1, 384>}, {transform_indices = @transform_4, window_bounds = array<i64: 1, 128, 128>}, {transform_indices = @transform_5, window_bounds = array<i64: 1, 1, 128>}, {transform_indices = @transform_6, window_bounds = array<i64: 1, 1, 128>}, {transform_indices = @transform_7, window_bounds = array<i64: 1, 1, 128>}, {transform_indices = @transform_8, window_bounds = array<i64: 1, 128, 512>}, {transform_indices = @transform_9, window_bounds = array<i64: 1, 1, 512>}, {transform_indices = @transform_10, window_bounds = array<i64: 1, 512, 128>}, {transform_indices = @transform_11, window_bounds = array<i64: 1, 1, 128>}, {transform_indices = @transform_12, window_bounds = array<i64: 1, 1, 128>}, {transform_indices = @transform_13, window_bounds = array<i64: 1, 1, 128>}, {pipeline_mode = #tpu.pipeline_mode<synchronous>, transform_indices = @transform_14, window_bounds = array<i64: 1, 128>}, {pipeline_mode = #tpu.pipeline_mode<synchronous>, transform_indices = @transform_15, window_bounds = array<i64: 1, 128>}, {transform_indices = @transform_16, window_bounds = array<i64: 1, 16, 128>}]} {
    %c0_i32 = arith.constant 0 : i32
    %0 = arith.cmpi eq, %arg1, %c0_i32 : i32
    %1 = arith.extui %0 : i1 to i32
    %c0_i32_0 = arith.constant 0 : i32
    %2 = arith.cmpi ne, %1, %c0_i32_0 : i32
    scf.if %2 {
      %c0_74 = arith.constant 0 : index
      %c0_75 = arith.constant 0 : index
      %c0_76 = arith.constant 0 : index
      %175 = vector.load %arg3[%c0_74, %c0_75, %c0_76] : memref<1x16x128xbf16, #tpu.memory_space<vmem>>, vector<1x16x128xbf16>
      %176 = vector.shape_cast %175 : vector<1x16x128xbf16> to vector<16x128xbf16>
      %c0_77 = arith.constant 0 : index
      %c0_78 = arith.constant 0 : index
      %177 = vector.load %arg19[%c0_77, %c0_78] : memref<16x128xbf16, #tpu.memory_space<vmem>>, vector<16x128xbf16>
      tpu.vector_store %arg19[%c0_77, %c0_78], %176 {strides = array<i32>} : memref<16x128xbf16, #tpu.memory_space<vmem>>, vector<16x128xbf16>,
    } else {
    }
    %c0 = arith.constant 0 : index
    %c0_1 = arith.constant 0 : index
    %3 = vector.load %arg19[%c0, %c0_1] : memref<16x128xbf16, #tpu.memory_space<vmem>>, vector<16x128xbf16>
    %c0_2 = arith.constant 0 : index
    %c0_3 = arith.constant 0 : index
    %c0_4 = arith.constant 0 : index
    %4 = vector.load %arg4[%c0_2, %c0_3, %c0_4] : memref<1x128x384xbf16, #tpu.memory_space<vmem>>, vector<1x128x384xbf16>
    %5 = vector.shape_cast %4 : vector<1x128x384xbf16> to vector<128x384xbf16>
    %cst = arith.constant dense<0.000000e+00> : vector<16x384xf32>
    %6 = tpu.matmul %3, %5, %cst {dimension_numbers = #tpu.dot_dimension_numbers<[1], [0], [0], [1], [0, 0, 1, 1], [], []>} : vector<16x128xbf16>, vector<128x384xbf16>, vector<16x384xf32> -> vector<16x384xf32>
    %c0_5 = arith.constant 0 : index
    %c0_6 = arith.constant 0 : index
    %c0_7 = arith.constant 0 : index
    %7 = vector.load %arg5[%c0_5, %c0_6, %c0_7] : memref<1x1x384xf32, #tpu.memory_space<vmem>>, vector<1x1x384xf32>
    %8 = vector.shape_cast %7 : vector<1x1x384xf32> to vector<1x384xf32>
    %9 = vector.broadcast %8 : vector<1x384xf32> to vector<16x384xf32>
    %10 = arith.addf %6, %9 : vector<16x384xf32>
    %11 = vector.extract_strided_slice %10 {offsets = [0, 0], sizes = [16, 128], strides = [1, 1]} : vector<16x384xf32> to vector<16x128xf32>
    %cst_8 = arith.constant 0.176776692 : f32
    %12 = vector.broadcast %cst_8 : f32 to vector<16x128xf32>
    %13 = arith.mulf %11, %12 : vector<16x128xf32>
    %14 = arith.truncf %13 : vector<16x128xf32> to vector<16x128xbf16>
    %15 = vector.extract_strided_slice %10 {offsets = [0, 128], sizes = [16, 128], strides = [1, 1]} : vector<16x384xf32> to vector<16x128xf32>
    %16 = arith.truncf %15 : vector<16x128xf32> to vector<16x128xbf16>
    %17 = vector.extract_strided_slice %10 {offsets = [0, 256], sizes = [16, 128], strides = [1, 1]} : vector<16x384xf32> to vector<16x128xf32>
    %18 = arith.truncf %17 : vector<16x128xf32> to vector<16x128xbf16>
    %c0_9 = arith.constant 0 : index
    %c0_10 = arith.constant 0 : index
    %19 = vector.load %arg2[%c0_9, %c0_10] : memref<16x16xf32, #tpu.memory_space<vmem>>, vector<16x16xf32>
    %20 = vector.extract_strided_slice %14 {offsets = [0, 0], sizes = [16, 32], strides = [1, 1]} : vector<16x128xbf16> to vector<16x32xbf16>
    %21 = vector.extract_strided_slice %16 {offsets = [0, 0], sizes = [16, 32], strides = [1, 1]} : vector<16x128xbf16> to vector<16x32xbf16>
    %22 = vector.extract_strided_slice %18 {offsets = [0, 0], sizes = [16, 32], strides = [1, 1]} : vector<16x128xbf16> to vector<16x32xbf16>
    %cst_11 = arith.constant dense<0.000000e+00> : vector<16x16xf32>
    %23 = tpu.matmul %20, %21, %cst_11 {dimension_numbers = #tpu.dot_dimension_numbers<[1], [1], [0], [0], [0, 0, 1, 0], [], []>} : vector<16x32xbf16>, vector<16x32xbf16>, vector<16x16xf32> -> vector<16x16xf32>
    %24 = arith.addf %23, %19 : vector<16x16xf32>
    %cst_12 = arith.constant dense<0xFF800000> : vector<16xf32>
    %25 = vector.multi_reduction <maximumf>, %24, %cst_12 [1] : vector<16x16xf32> to vector<16xf32>
    %26 = vector.shape_cast %25 : vector<16xf32> to vector<16x1xf32>
    %27 = vector.broadcast %26 : vector<16x1xf32> to vector<16x16xf32>
    %28 = arith.subf %24, %27 : vector<16x16xf32>
    %29 = math.exp %28 : vector<16x16xf32>
    %cst_13 = arith.constant dense<0.000000e+00> : vector<16xf32>
    %30 = vector.multi_reduction <add>, %29, %cst_13 [1] : vector<16x16xf32> to vector<16xf32>
    %31 = vector.shape_cast %30 : vector<16xf32> to vector<16x1xf32>
    %32 = arith.truncf %29 : vector<16x16xf32> to vector<16x16xbf16>
    %cst_14 = arith.constant dense<0.000000e+00> : vector<16x32xf32>
    %33 = tpu.matmul %32, %22, %cst_14 {dimension_numbers = #tpu.dot_dimension_numbers<[1], [0], [0], [1], [0, 0, 1, 1], [], []>} : vector<16x16xbf16>, vector<16x32xbf16>, vector<16x32xf32> -> vector<16x32xf32>
    %34 = tpu.reciprocal %31 {approx = true} : vector<16x1xf32> -> vector<16x1xf32>
    %35 = vector.broadcast %34 : vector<16x1xf32> to vector<16x32xf32>
    %36 = arith.mulf %33, %35 : vector<16x32xf32>
    %37 = vector.extract_strided_slice %14 {offsets = [0, 32], sizes = [16, 32], strides = [1, 1]} : vector<16x128xbf16> to vector<16x32xbf16>
    %38 = vector.extract_strided_slice %16 {offsets = [0, 32], sizes = [16, 32], strides = [1, 1]} : vector<16x128xbf16> to vector<16x32xbf16>
    %39 = vector.extract_strided_slice %18 {offsets = [0, 32], sizes = [16, 32], strides = [1, 1]} : vector<16x128xbf16> to vector<16x32xbf16>
    %cst_15 = arith.constant dense<0.000000e+00> : vector<16x16xf32>
    %40 = tpu.matmul %37, %38, %cst_15 {dimension_numbers = #tpu.dot_dimension_numbers<[1], [1], [0], [0], [0, 0, 1, 0], [], []>} : vector<16x32xbf16>, vector<16x32xbf16>, vector<16x16xf32> -> vector<16x16xf32>
    %41 = arith.addf %40, %19 : vector<16x16xf32>
    %cst_16 = arith.constant dense<0xFF800000> : vector<16xf32>
    %42 = vector.multi_reduction <maximumf>, %41, %cst_16 [1] : vector<16x16xf32> to vector<16xf32>
    %43 = vector.shape_cast %42 : vector<16xf32> to vector<16x1xf32>
    %44 = vector.broadcast %43 : vector<16x1xf32> to vector<16x16xf32>
    %45 = arith.subf %41, %44 : vector<16x16xf32>
    %46 = math.exp %45 : vector<16x16xf32>
    %cst_17 = arith.constant dense<0.000000e+00> : vector<16xf32>
    %47 = vector.multi_reduction <add>, %46, %cst_17 [1] : vector<16x16xf32> to vector<16xf32>
    %48 = vector.shape_cast %47 : vector<16xf32> to vector<16x1xf32>
    %49 = arith.truncf %46 : vector<16x16xf32> to vector<16x16xbf16>
    %cst_18 = arith.constant dense<0.000000e+00> : vector<16x32xf32>
    %50 = tpu.matmul %49, %39, %cst_18 {dimension_numbers = #tpu.dot_dimension_numbers<[1], [0], [0], [1], [0, 0, 1, 1], [], []>} : vector<16x16xbf16>, vector<16x32xbf16>, vector<16x32xf32> -> vector<16x32xf32>
    %51 = tpu.reciprocal %48 {approx = true} : vector<16x1xf32> -> vector<16x1xf32>
    %52 = vector.broadcast %51 : vector<16x1xf32> to vector<16x32xf32>
    %53 = arith.mulf %50, %52 : vector<16x32xf32>
    %54 = vector.extract_strided_slice %14 {offsets = [0, 64], sizes = [16, 32], strides = [1, 1]} : vector<16x128xbf16> to vector<16x32xbf16>
    %55 = vector.extract_strided_slice %16 {offsets = [0, 64], sizes = [16, 32], strides = [1, 1]} : vector<16x128xbf16> to vector<16x32xbf16>
    %56 = vector.extract_strided_slice %18 {offsets = [0, 64], sizes = [16, 32], strides = [1, 1]} : vector<16x128xbf16> to vector<16x32xbf16>
    %cst_19 = arith.constant dense<0.000000e+00> : vector<16x16xf32>
    %57 = tpu.matmul %54, %55, %cst_19 {dimension_numbers = #tpu.dot_dimension_numbers<[1], [1], [0], [0], [0, 0, 1, 0], [], []>} : vector<16x32xbf16>, vector<16x32xbf16>, vector<16x16xf32> -> vector<16x16xf32>
    %58 = arith.addf %57, %19 : vector<16x16xf32>
    %cst_20 = arith.constant dense<0xFF800000> : vector<16xf32>
    %59 = vector.multi_reduction <maximumf>, %58, %cst_20 [1] : vector<16x16xf32> to vector<16xf32>
    %60 = vector.shape_cast %59 : vector<16xf32> to vector<16x1xf32>
    %61 = vector.broadcast %60 : vector<16x1xf32> to vector<16x16xf32>
    %62 = arith.subf %58, %61 : vector<16x16xf32>
    %63 = math.exp %62 : vector<16x16xf32>
    %cst_21 = arith.constant dense<0.000000e+00> : vector<16xf32>
    %64 = vector.multi_reduction <add>, %63, %cst_21 [1] : vector<16x16xf32> to vector<16xf32>
    %65 = vector.shape_cast %64 : vector<16xf32> to vector<16x1xf32>
    %66 = arith.truncf %63 : vector<16x16xf32> to vector<16x16xbf16>
    %cst_22 = arith.constant dense<0.000000e+00> : vector<16x32xf32>
    %67 = tpu.matmul %66, %56, %cst_22 {dimension_numbers = #tpu.dot_dimension_numbers<[1], [0], [0], [1], [0, 0, 1, 1], [], []>} : vector<16x16xbf16>, vector<16x32xbf16>, vector<16x32xf32> -> vector<16x32xf32>
    %68 = tpu.reciprocal %65 {approx = true} : vector<16x1xf32> -> vector<16x1xf32>
    %69 = vector.broadcast %68 : vector<16x1xf32> to vector<16x32xf32>
    %70 = arith.mulf %67, %69 : vector<16x32xf32>
    %71 = vector.extract_strided_slice %14 {offsets = [0, 96], sizes = [16, 32], strides = [1, 1]} : vector<16x128xbf16> to vector<16x32xbf16>
    %72 = vector.extract_strided_slice %16 {offsets = [0, 96], sizes = [16, 32], strides = [1, 1]} : vector<16x128xbf16> to vector<16x32xbf16>
    %73 = vector.extract_strided_slice %18 {offsets = [0, 96], sizes = [16, 32], strides = [1, 1]} : vector<16x128xbf16> to vector<16x32xbf16>
    %cst_23 = arith.constant dense<0.000000e+00> : vector<16x16xf32>
    %74 = tpu.matmul %71, %72, %cst_23 {dimension_numbers = #tpu.dot_dimension_numbers<[1], [1], [0], [0], [0, 0, 1, 0], [], []>} : vector<16x32xbf16>, vector<16x32xbf16>, vector<16x16xf32> -> vector<16x16xf32>
    %75 = arith.addf %74, %19 : vector<16x16xf32>
    %cst_24 = arith.constant dense<0xFF800000> : vector<16xf32>
    %76 = vector.multi_reduction <maximumf>, %75, %cst_24 [1] : vector<16x16xf32> to vector<16xf32>
    %77 = vector.shape_cast %76 : vector<16xf32> to vector<16x1xf32>
    %78 = vector.broadcast %77 : vector<16x1xf32> to vector<16x16xf32>
    %79 = arith.subf %75, %78 : vector<16x16xf32>
    %80 = math.exp %79 : vector<16x16xf32>
    %cst_25 = arith.constant dense<0.000000e+00> : vector<16xf32>
    %81 = vector.multi_reduction <add>, %80, %cst_25 [1] : vector<16x16xf32> to vector<16xf32>
    %82 = vector.shape_cast %81 : vector<16xf32> to vector<16x1xf32>
    %83 = arith.truncf %80 : vector<16x16xf32> to vector<16x16xbf16>
    %cst_26 = arith.constant dense<0.000000e+00> : vector<16x32xf32>
    %84 = tpu.matmul %83, %73, %cst_26 {dimension_numbers = #tpu.dot_dimension_numbers<[1], [0], [0], [1], [0, 0, 1, 1], [], []>} : vector<16x16xbf16>, vector<16x32xbf16>, vector<16x32xf32> -> vector<16x32xf32>
    %85 = tpu.reciprocal %82 {approx = true} : vector<16x1xf32> -> vector<16x1xf32>
    %86 = vector.broadcast %85 : vector<16x1xf32> to vector<16x32xf32>
    %87 = arith.mulf %84, %86 : vector<16x32xf32>
    %88 = tpu.concatenate %36, %53, %70, %87 in 1 : vector<16x32xf32>, vector<16x32xf32>, vector<16x32xf32>, vector<16x32xf32> -> vector<16x128xf32>
    %89 = arith.truncf %88 : vector<16x128xf32> to vector<16x128xbf16>
    %c0_27 = arith.constant 0 : index
    %c0_28 = arith.constant 0 : index
    %c0_29 = arith.constant 0 : index
    %90 = vector.load %arg6[%c0_27, %c0_28, %c0_29] : memref<1x128x128xbf16, #tpu.memory_space<vmem>>, vector<1x128x128xbf16>
    %91 = vector.shape_cast %90 : vector<1x128x128xbf16> to vector<128x128xbf16>
    %cst_30 = arith.constant dense<0.000000e+00> : vector<16x128xf32>
    %92 = tpu.matmul %89, %91, %cst_30 {dimension_numbers = #tpu.dot_dimension_numbers<[1], [0], [0], [1], [0, 0, 1, 1], [], []>} : vector<16x128xbf16>, vector<128x128xbf16>, vector<16x128xf32> -> vector<16x128xf32>
    %c0_31 = arith.constant 0 : index
    %c0_32 = arith.constant 0 : index
    %c0_33 = arith.constant 0 : index
    %93 = vector.load %arg7[%c0_31, %c0_32, %c0_33] : memref<1x1x128xf32, #tpu.memory_space<vmem>>, vector<1x1x128xf32>
    %94 = vector.shape_cast %93 : vector<1x1x128xf32> to vector<1x128xf32>
    %95 = vector.broadcast %94 : vector<1x128xf32> to vector<16x128xf32>
    %96 = arith.addf %92, %95 : vector<16x128xf32>
    %97 = arith.extf %3 : vector<16x128xbf16> to vector<16x128xf32>
    %98 = arith.addf %97, %96 : vector<16x128xf32>
    %c0_34 = arith.constant 0 : index
    %c0_35 = arith.constant 0 : index
    %c0_36 = arith.constant 0 : index
    %99 = vector.load %arg8[%c0_34, %c0_35, %c0_36] : memref<1x1x128xf32, #tpu.memory_space<vmem>>, vector<1x1x128xf32>
    %100 = vector.shape_cast %99 : vector<1x1x128xf32> to vector<1x128xf32>
    %c0_37 = arith.constant 0 : index
    %c0_38 = arith.constant 0 : index
    %c0_39 = arith.constant 0 : index
    %101 = vector.load %arg9[%c0_37, %c0_38, %c0_39] : memref<1x1x128xf32, #tpu.memory_space<vmem>>, vector<1x1x128xf32>
    %102 = vector.shape_cast %101 : vector<1x1x128xf32> to vector<1x128xf32>
    %cst_40 = arith.constant dense<0.000000e+00> : vector<16xf32>
    %103 = vector.multi_reduction <add>, %98, %cst_40 [1] : vector<16x128xf32> to vector<16xf32>
    %104 = vector.shape_cast %103 : vector<16xf32> to vector<16x1xf32>
    %cst_41 = arith.constant 1.280000e+02 : f32
    %105 = vector.broadcast %cst_41 : f32 to vector<16x1xf32>
    %106 = arith.divf %104, %105 : vector<16x1xf32>
    %107 = vector.broadcast %106 : vector<16x1xf32> to vector<16x128xf32>
    %108 = arith.subf %98, %107 : vector<16x128xf32>
    %109 = arith.mulf %108, %108 : vector<16x128xf32>
    %cst_42 = arith.constant dense<0.000000e+00> : vector<16xf32>
    %110 = vector.multi_reduction <add>, %109, %cst_42 [1] : vector<16x128xf32> to vector<16xf32>
    %111 = vector.shape_cast %110 : vector<16xf32> to vector<16x1xf32>
    %cst_43 = arith.constant 1.280000e+02 : f32
    %112 = vector.broadcast %cst_43 : f32 to vector<16x1xf32>
    %113 = arith.divf %111, %112 : vector<16x1xf32>
    %114 = vector.broadcast %106 : vector<16x1xf32> to vector<16x128xf32>
    %115 = arith.subf %98, %114 : vector<16x128xf32>
    %cst_44 = arith.constant 9.99999974E-6 : f32
    %116 = vector.broadcast %cst_44 : f32 to vector<16x1xf32>
    %117 = arith.addf %113, %116 : vector<16x1xf32>
    %118 = math.rsqrt %117 : vector<16x1xf32>
    %119 = vector.broadcast %118 : vector<16x1xf32> to vector<16x128xf32>
    %120 = arith.mulf %115, %119 : vector<16x128xf32>
    %121 = vector.broadcast %100 : vector<1x128xf32> to vector<16x128xf32>
    %122 = arith.mulf %120, %121 : vector<16x128xf32>
    %123 = vector.broadcast %102 : vector<1x128xf32> to vector<16x128xf32>
    %124 = arith.addf %122, %123 : vector<16x128xf32>
    %125 = arith.truncf %124 : vector<16x128xf32> to vector<16x128xbf16>
    %c0_45 = arith.constant 0 : index
    %c0_46 = arith.constant 0 : index
    %c0_47 = arith.constant 0 : index
    %126 = vector.load %arg10[%c0_45, %c0_46, %c0_47] : memref<1x128x512xbf16, #tpu.memory_space<vmem>>, vector<1x128x512xbf16>
    %127 = vector.shape_cast %126 : vector<1x128x512xbf16> to vector<128x512xbf16>
    %cst_48 = arith.constant dense<0.000000e+00> : vector<16x512xf32>
    %128 = tpu.matmul %125, %127, %cst_48 {dimension_numbers = #tpu.dot_dimension_numbers<[1], [0], [0], [1], [0, 0, 1, 1], [], []>} : vector<16x128xbf16>, vector<128x512xbf16>, vector<16x512xf32> -> vector<16x512xf32>
    %c0_49 = arith.constant 0 : index
    %c0_50 = arith.constant 0 : index
    %c0_51 = arith.constant 0 : index
    %129 = vector.load %arg11[%c0_49, %c0_50, %c0_51] : memref<1x1x512xf32, #tpu.memory_space<vmem>>, vector<1x1x512xf32>
    %130 = vector.shape_cast %129 : vector<1x1x512xf32> to vector<1x512xf32>
    %131 = vector.broadcast %130 : vector<1x512xf32> to vector<16x512xf32>
    %132 = arith.addf %128, %131 : vector<16x512xf32>
    %cst_52 = arith.constant 0.000000e+00 : f32
    %133 = vector.broadcast %cst_52 : f32 to vector<16x512xf32>
    %134 = arith.maximumf %132, %133 : vector<16x512xf32>
    %135 = arith.truncf %134 : vector<16x512xf32> to vector<16x512xbf16>
    %c0_53 = arith.constant 0 : index
    %c0_54 = arith.constant 0 : index
    %c0_55 = arith.constant 0 : index
    %136 = vector.load %arg12[%c0_53, %c0_54, %c0_55] : memref<1x512x128xbf16, #tpu.memory_space<vmem>>, vector<1x512x128xbf16>
    %137 = vector.shape_cast %136 : vector<1x512x128xbf16> to vector<512x128xbf16>
    %cst_56 = arith.constant dense<0.000000e+00> : vector<16x128xf32>
    %138 = tpu.matmul %135, %137, %cst_56 {dimension_numbers = #tpu.dot_dimension_numbers<[1], [0], [0], [1], [0, 0, 1, 1], [], []>} : vector<16x512xbf16>, vector<512x128xbf16>, vector<16x128xf32> -> vector<16x128xf32>
    %c0_57 = arith.constant 0 : index
    %c0_58 = arith.constant 0 : index
    %c0_59 = arith.constant 0 : index
    %139 = vector.load %arg13[%c0_57, %c0_58, %c0_59] : memref<1x1x128xf32, #tpu.memory_space<vmem>>, vector<1x1x128xf32>
    %140 = vector.shape_cast %139 : vector<1x1x128xf32> to vector<1x128xf32>
    %141 = vector.broadcast %140 : vector<1x128xf32> to vector<16x128xf32>
    %142 = arith.addf %138, %141 : vector<16x128xf32>
    %143 = arith.addf %124, %142 : vector<16x128xf32>
    %c0_60 = arith.constant 0 : index
    %c0_61 = arith.constant 0 : index
    %c0_62 = arith.constant 0 : index
    %144 = vector.load %arg14[%c0_60, %c0_61, %c0_62] : memref<1x1x128xf32, #tpu.memory_space<vmem>>, vector<1x1x128xf32>
    %145 = vector.shape_cast %144 : vector<1x1x128xf32> to vector<1x128xf32>
    %c0_63 = arith.constant 0 : index
    %c0_64 = arith.constant 0 : index
    %c0_65 = arith.constant 0 : index
    %146 = vector.load %arg15[%c0_63, %c0_64, %c0_65] : memref<1x1x128xf32, #tpu.memory_space<vmem>>, vector<1x1x128xf32>
    %147 = vector.shape_cast %146 : vector<1x1x128xf32> to vector<1x128xf32>
    %cst_66 = arith.constant dense<0.000000e+00> : vector<16xf32>
    %148 = vector.multi_reduction <add>, %143, %cst_66 [1] : vector<16x128xf32> to vector<16xf32>
    %149 = vector.shape_cast %148 : vector<16xf32> to vector<16x1xf32>
    %cst_67 = arith.constant 1.280000e+02 : f32
    %150 = vector.broadcast %cst_67 : f32 to vector<16x1xf32>
    %151 = arith.divf %149, %150 : vector<16x1xf32>
    %152 = vector.broadcast %151 : vector<16x1xf32> to vector<16x128xf32>
    %153 = arith.subf %143, %152 : vector<16x128xf32>
    %154 = arith.mulf %153, %153 : vector<16x128xf32>
    %cst_68 = arith.constant dense<0.000000e+00> : vector<16xf32>
    %155 = vector.multi_reduction <add>, %154, %cst_68 [1] : vector<16x128xf32> to vector<16xf32>
    %156 = vector.shape_cast %155 : vector<16xf32> to vector<16x1xf32>
    %cst_69 = arith.constant 1.280000e+02 : f32
    %157 = vector.broadcast %cst_69 : f32 to vector<16x1xf32>
    %158 = arith.divf %156, %157 : vector<16x1xf32>
    %159 = vector.broadcast %151 : vector<16x1xf32> to vector<16x128xf32>
    %160 = arith.subf %143, %159 : vector<16x128xf32>
    %cst_70 = arith.constant 9.99999974E-6 : f32
    %161 = vector.broadcast %cst_70 : f32 to vector<16x1xf32>
    %162 = arith.addf %158, %161 : vector<16x1xf32>
    %163 = math.rsqrt %162 : vector<16x1xf32>
    %164 = vector.broadcast %163 : vector<16x1xf32> to vector<16x128xf32>
    %165 = arith.mulf %160, %164 : vector<16x128xf32>
    %166 = vector.broadcast %145 : vector<1x128xf32> to vector<16x128xf32>
    %167 = arith.mulf %165, %166 : vector<16x128xf32>
    %168 = vector.broadcast %147 : vector<1x128xf32> to vector<16x128xf32>
    %169 = arith.addf %167, %168 : vector<16x128xf32>
    %170 = arith.truncf %169 : vector<16x128xf32> to vector<16x128xbf16>
    %c0_71 = arith.constant 0 : index
    %c0_72 = arith.constant 0 : index
    %171 = vector.load %arg19[%c0_71, %c0_72] : memref<16x128xbf16, #tpu.memory_space<vmem>>, vector<16x128xbf16>
    tpu.vector_store %arg19[%c0_71, %c0_72], %170 {strides = array<i32>} : memref<16x128xbf16, #tpu.memory_space<vmem>>, vector<16x128xbf16>,
    %c1_i32 = arith.constant 1 : i32
    %172 = arith.cmpi eq, %arg1, %c1_i32 : i32
    %173 = arith.extui %172 : i1 to i32
    %c0_i32_73 = arith.constant 0 : i32
    %174 = arith.cmpi ne, %173, %c0_i32_73 : i32
    scf.if %174 {
      %c0_74 = arith.constant 0 : index
      %c0_75 = arith.constant 0 : index
      %175 = vector.load %arg16[%c0_74, %c0_75] : memref<1x128xf32, #tpu.memory_space<vmem>>, vector<1x128xf32>
      %c0_76 = arith.constant 0 : index
      %c0_77 = arith.constant 0 : index
      %176 = vector.load %arg17[%c0_76, %c0_77] : memref<1x128xf32, #tpu.memory_space<vmem>>, vector<1x128xf32>
      %cst_78 = arith.constant dense<0.000000e+00> : vector<16xf32>
      %177 = vector.multi_reduction <add>, %169, %cst_78 [1] : vector<16x128xf32> to vector<16xf32>
      %178 = vector.shape_cast %177 : vector<16xf32> to vector<16x1xf32>
      %cst_79 = arith.constant 1.280000e+02 : f32
      %179 = vector.broadcast %cst_79 : f32 to vector<16x1xf32>
      %180 = arith.divf %178, %179 : vector<16x1xf32>
      %181 = vector.broadcast %180 : vector<16x1xf32> to vector<16x128xf32>
      %182 = arith.subf %169, %181 : vector<16x128xf32>
      %183 = arith.mulf %182, %182 : vector<16x128xf32>
      %cst_80 = arith.constant dense<0.000000e+00> : vector<16xf32>
      %184 = vector.multi_reduction <add>, %183, %cst_80 [1] : vector<16x128xf32> to vector<16xf32>
      %185 = vector.shape_cast %184 : vector<16xf32> to vector<16x1xf32>
      %cst_81 = arith.constant 1.280000e+02 : f32
      %186 = vector.broadcast %cst_81 : f32 to vector<16x1xf32>
      %187 = arith.divf %185, %186 : vector<16x1xf32>
      %188 = vector.broadcast %180 : vector<16x1xf32> to vector<16x128xf32>
      %189 = arith.subf %169, %188 : vector<16x128xf32>
      %cst_82 = arith.constant 9.99999974E-6 : f32
      %190 = vector.broadcast %cst_82 : f32 to vector<16x1xf32>
      %191 = arith.addf %187, %190 : vector<16x1xf32>
      %192 = math.rsqrt %191 : vector<16x1xf32>
      %193 = vector.broadcast %192 : vector<16x1xf32> to vector<16x128xf32>
      %194 = arith.mulf %189, %193 : vector<16x128xf32>
      %195 = vector.broadcast %175 : vector<1x128xf32> to vector<16x128xf32>
      %196 = arith.mulf %194, %195 : vector<16x128xf32>
      %197 = vector.broadcast %176 : vector<1x128xf32> to vector<16x128xf32>
      %198 = arith.addf %196, %197 : vector<16x128xf32>
      %199 = arith.truncf %198 : vector<16x128xf32> to vector<16x128xbf16>
      %c0_83 = arith.constant 0 : index
      %c0_84 = arith.constant 0 : index
      %c0_85 = arith.constant 0 : index
      %200 = vector.load %arg18[%c0_83, %c0_84, %c0_85] : memref<1x16x128xbf16, #tpu.memory_space<vmem>>, vector<1x16x128xbf16>
      %201 = vector.shape_cast %200 : vector<1x16x128xbf16> to vector<16x128xbf16>
      %202 = vector.shape_cast %199 : vector<16x128xbf16> to vector<1x16x128xbf16>
      tpu.vector_store %arg18[%c0_83, %c0_84, %c0_85], %202 {strides = array<i32>} : memref<1x16x128xbf16, #tpu.memory_space<vmem>>, vector<1x16x128xbf16>,
    } else {
    }
    return
  }
  func.func @transform_0(%arg0: i32, %arg1: i32) -> (i32, i32) {
    %c0_i32 = arith.constant 0 : i32
    %c0_i32_0 = arith.constant 0 : i32
    %c0_i32_1 = arith.constant 0 : i32
    return %c0_i32, %c0_i32_0 : i32, i32
  }
  func.func @transform_1(%arg0: i32, %arg1: i32) -> (i32, i32, i32) {
    %c0_i32 = arith.constant 0 : i32
    %c0_i32_0 = arith.constant 0 : i32
    %c0_i32_1 = arith.constant 0 : i32
    return %arg0, %c0_i32, %c0_i32_0 : i32, i32, i32
  }
  func.func @transform_2(%arg0: i32, %arg1: i32) -> (i32, i32, i32) {
    %c0_i32 = arith.constant 0 : i32
    %c0_i32_0 = arith.constant 0 : i32
    %c0_i32_1 = arith.constant 0 : i32
    return %arg1, %c0_i32, %c0_i32_0 : i32, i32, i32
  }
  func.func @transform_3(%arg0: i32, %arg1: i32) -> (i32, i32, i32) {
    %c0_i32 = arith.constant 0 : i32
    %c0_i32_0 = arith.constant 0 : i32
    %c0_i32_1 = arith.constant 0 : i32
    return %arg1, %c0_i32, %c0_i32_0 : i32, i32, i32
  }
  func.func @transform_4(%arg0: i32, %arg1: i32) -> (i32, i32, i32) {
    %c0_i32 = arith.constant 0 : i32
    %c0_i32_0 = arith.constant 0 : i32
    %c0_i32_1 = arith.constant 0 : i32
    return %arg1, %c0_i32, %c0_i32_0 : i32, i32, i32
  }
  func.func @transform_5(%arg0: i32, %arg1: i32) -> (i32, i32, i32) {
    %c0_i32 = arith.constant 0 : i32
    %c0_i32_0 = arith.constant 0 : i32
    %c0_i32_1 = arith.constant 0 : i32
    return %arg1, %c0_i32, %c0_i32_0 : i32, i32, i32
  }
  func.func @transform_6(%arg0: i32, %arg1: i32) -> (i32, i32, i32) {
    %c0_i32 = arith.constant 0 : i32
    %c0_i32_0 = arith.constant 0 : i32
    %c0_i32_1 = arith.constant 0 : i32
    return %arg1, %c0_i32, %c0_i32_0 : i32, i32, i32
  }
  func.func @transform_7(%arg0: i32, %arg1: i32) -> (i32, i32, i32) {
    %c0_i32 = arith.constant 0 : i32
    %c0_i32_0 = arith.constant 0 : i32
    %c0_i32_1 = arith.constant 0 : i32
    return %arg1, %c0_i32, %c0_i32_0 : i32, i32, i32
  }
  func.func @transform_8(%arg0: i32, %arg1: i32) -> (i32, i32, i32) {
    %c0_i32 = arith.constant 0 : i32
    %c0_i32_0 = arith.constant 0 : i32
    %c0_i32_1 = arith.constant 0 : i32
    return %arg1, %c0_i32, %c0_i32_0 : i32, i32, i32
  }
  func.func @transform_9(%arg0: i32, %arg1: i32) -> (i32, i32, i32) {
    %c0_i32 = arith.constant 0 : i32
    %c0_i32_0 = arith.constant 0 : i32
    %c0_i32_1 = arith.constant 0 : i32
    return %arg1, %c0_i32, %c0_i32_0 : i32, i32, i32
  }
  func.func @transform_10(%arg0: i32, %arg1: i32) -> (i32, i32, i32) {
    %c0_i32 = arith.constant 0 : i32
    %c0_i32_0 = arith.constant 0 : i32
    %c0_i32_1 = arith.constant 0 : i32
    return %arg1, %c0_i32, %c0_i32_0 : i32, i32, i32
  }
  func.func @transform_11(%arg0: i32, %arg1: i32) -> (i32, i32, i32) {
    %c0_i32 = arith.constant 0 : i32
    %c0_i32_0 = arith.constant 0 : i32
    %c0_i32_1 = arith.constant 0 : i32
    return %arg1, %c0_i32, %c0_i32_0 : i32, i32, i32
  }
  func.func @transform_12(%arg0: i32, %arg1: i32) -> (i32, i32, i32) {
    %c0_i32 = arith.constant 0 : i32
    %c0_i32_0 = arith.constant 0 : i32
    %c0_i32_1 = arith.constant 0 : i32
    return %arg1, %c0_i32, %c0_i32_0 : i32, i32, i32
  }
  func.func @transform_13(%arg0: i32, %arg1: i32) -> (i32, i32, i32) {
    %c0_i32 = arith.constant 0 : i32
    %c0_i32_0 = arith.constant 0 : i32
    %c0_i32_1 = arith.constant 0 : i32
    return %arg1, %c0_i32, %c0_i32_0 : i32, i32, i32
  }
  func.func @transform_14(%arg0: i32, %arg1: i32) -> (i32, i32) {
    %c0_i32 = arith.constant 0 : i32
    %c0_i32_0 = arith.constant 0 : i32
    %c0_i32_1 = arith.constant 0 : i32
    return %c0_i32, %c0_i32_0 : i32, i32
  }
  func.func @transform_15(%arg0: i32, %arg1: i32) -> (i32, i32) {
    %c0_i32 = arith.constant 0 : i32
    %c0_i32_0 = arith.constant 0 : i32
    %c0_i32_1 = arith.constant 0 : i32
    return %c0_i32, %c0_i32_0 : i32, i32
  }
  func.func @transform_16(%arg0: i32, %arg1: i32) -> (i32, i32, i32) {
    %c0_i32 = arith.constant 0 : i32
    %c0_i32_0 = arith.constant 0 : i32
    %c0_i32_1 = arith.constant 0 : i32
    return %arg0, %c0_i32, %c0_i32_0 : i32, i32, i32
  }
}

</mosaic_0001>

<bundles_post_ra>
// kernel: gpt2_forward.3
= control target key start
LH: loop header
LB: loop body
LE: loop exit
PB: predicated region body
PF: predicated region fallthrough
CT: control target
= control target key end

     0   :  { %7 = vsyncpa [#allocation4], 0  ;;  %s892_s0 = inlined_call_operand.vmem [shape: bf16[32,128], index: 0, kind: input, shape index: {}]   ;;  %s893_s1 = inlined_call_operand.vmem [shape: bf16[128,256], index: 1, kind: input, shape index: {}]   ;;  %s894_s2 = inlined_call_operand.hbm [shape: f32[32,256], index: 2, kind: output, shape index: {}]  }
   0x1   :  { %9 = vsyncpa [#allocation4 + $0x1], 0  ;;  %s744_s9 = smov 0   ;;  %s746_s10 = smov 0  }
   0x2   :  { %s748_s11 = smov 0   ;;  %s750_s12 = smov 0  }
   0x3   :  { %s752_s13 = smov 0   ;;  %s754_s14 = smov 0  }
   0x4 LB: > { %s523_s15 = sadd.s32 4294967295, %s723_s14   ;;  %s524_s16 = sadd.s32 4294967294, %s723_s14   ;;  %s723_s14 = sphi %s754_s14, %s15_s14   ;;  %s719_s13 = sphi %s752_s13, %s901_s13   ;;  %s715_s12 = sphi %s750_s12, %s900_s12   ;;  %s711_s11 = sphi %s748_s11, %s899_s11   ;;  %s707_s10 = sphi %s746_s10, %s898_s10   ;;  %s703_s9 = sphi %s744_s9, %s897_s9  }
   0x5   : > { %s27_s17 = sadd.s32 1, %s719_s13  ;;  %s60_s18 = sadd.s32 1, %s711_s11 }
   0x6   : > { %p29_p0 = scmp.ge.s32.totalorder %s27_s17, 2  ;;  %p67_p1 = scmp.ne.s32.totalorder %s711_s11, %s707_s10 }
   0x7   : > { %p68_p2 = scmp.eq.s32.totalorder %s723_s14, 0  ;;  %p99_p3 = scmp.eq.s32.totalorder %s523_s15, 1 }
   0x8   : > { %s903_s17 = smov (%p29_p0, %s27_s17), 0  ;;  %p104_p6 = scmp.ne.s32.totalorder %s707_s10, %s703_s9 }
   0x9   : > { %p69_p4 = por %p68_p2, %p67_p1  ;;  %p783_p5 = por %p99_p3, %p67_p1 }
   0xa   : > { %s57_s20 = ssub.s32 %s719_s13, %s903_s17  ;;  %p105_p8 = scmp.eq.s32.totalorder %s524_s16, 1 }
   0xb   : > { %p58_p7 = scmp.eq.s32.totalorder %s57_s20, 0  ;;  %p527_p10 = scmp.ge.s32.totalorder %s723_s14, 2 }
   0xc   : > { %p794_p9 = por %p105_p8, %p104_p6 }
   0xd   : > { %s792_s21 = scalar_select %p58_p7, %s711_s11, %s60_s18  }
   0xe   : > { %130 = sbr.rel (%p527_p10) target bundleno = 35 (0x23), region = 20 }
  0x15   : > { %133 = sbr.rel (!%p69_p4) target bundleno = 35 (0x23), region = 24  ;;  %s135_s23 = sand.u32 (%p69_p4), 1, %s711_s11  }
  0x16   : > { %s529_s24 = sshll.u32 (%p69_p4), %s719_s13, 2  ;;  %s528_s25 = sshll.u32 (%p69_p4), %s135_s23, 6 }
  0x17   : > { %s806_s28 = scalar_lea.vmem (%p69_p4), %s893_s1, %s529_s24  ;;  %s137_s29 = scalar_lea.vmem (%p69_p4), [#allocation2], %s528_s25 }
  0x18   : > { %v155_v0 = vld [vmem:[%s806_s28] sm:$0xf] (%p69_p4)  ;;  %v157_v1 = vld [vmem:[%s806_s28 + $0x8] sm:$0xf] (%p69_p4)  ;;  %v159_v2 = vld [vmem:[%s806_s28 + $0x10] sm:$0xf] (%p69_p4) }
  0x19   : > { %156 = vst [vmem:[%s137_s29] sm:$0xf] (%p69_p4), %v155_v0  ;;  %158 = vst [vmem:[%s137_s29 + $0x4] sm:$0xf] (%p69_p4), %v157_v1  ;;  %v161_v3 = vld [vmem:[%s806_s28 + $0x18] sm:$0xf] (%p69_p4) }
  0x1a   : > { %v163_v4 = vld [vmem:[%s806_s28 + $0x20] sm:$0xf] (%p69_p4)  ;;  %160 = vst [vmem:[%s137_s29 + $0x8] sm:$0xf] (%p69_p4), %v159_v2  ;;  %162 = vst [vmem:[%s137_s29 + $0xc] sm:$0xf] (%p69_p4), %v161_v3 }
  0x1b   : > { %164 = vst [vmem:[%s137_s29 + $0x10] sm:$0xf] (%p69_p4), %v163_v4  ;;  %v165_v5 = vld [vmem:[%s806_s28 + $0x28] sm:$0xf] (%p69_p4)  ;;  %v167_v6 = vld [vmem:[%s806_s28 + $0x30] sm:$0xf] (%p69_p4) }
  0x1c   : > { %v169_v7 = vld [vmem:[%s806_s28 + $0x38] sm:$0xf]  ;;  %166 = vst [vmem:[%s137_s29 + $0x14] sm:$0xf] %v165_v5  ;;  %168 = vst [vmem:[%s137_s29 + $0x18] sm:$0xf] %v167_v6 }
  0x1d   : > { %170 = vst [vmem:[%s137_s29 + $0x1c] sm:$0xf] %v169_v7  ;;  %v171_v8 = vld [vmem:[%s806_s28 + $0x40] sm:$0xf]  ;;  %v173_v9 = vld [vmem:[%s806_s28 + $0x48] sm:$0xf] }
  0x1e   : > { %v175_v10 = vld [vmem:[%s806_s28 + $0x50] sm:$0xf]  ;;  %172 = vst [vmem:[%s137_s29 + $0x20] sm:$0xf] %v171_v8  ;;  %174 = vst [vmem:[%s137_s29 + $0x24] sm:$0xf] %v173_v9 }
  0x1f   : > { %176 = vst [vmem:[%s137_s29 + $0x28] sm:$0xf] %v175_v10  ;;  %v177_v11 = vld [vmem:[%s806_s28 + $0x58] sm:$0xf]  ;;  %v179_v12 = vld [vmem:[%s806_s28 + $0x60] sm:$0xf] }
  0x20   : > { %v181_v13 = vld [vmem:[%s806_s28 + $0x68] sm:$0xf]  ;;  %178 = vst [vmem:[%s137_s29 + $0x2c] sm:$0xf] %v177_v11  ;;  %180 = vst [vmem:[%s137_s29 + $0x30] sm:$0xf] %v179_v12 }
  0x21   : > { %182 = vst [vmem:[%s137_s29 + $0x34] sm:$0xf] %v181_v13  ;;  %v183_v14 = vld [vmem:[%s806_s28 + $0x70] sm:$0xf]  ;;  %v185_v15 = vld [vmem:[%s806_s28 + $0x78] sm:$0xf] }
  0x22   : > { %184 = vst [vmem:[%s137_s29 + $0x38] sm:$0xf] %v183_v14  ;;  %186 = vst [vmem:[%s137_s29 + $0x3c] sm:$0xf] %v185_v15 }
  0x23 PF: > { %p530_p11 = scmp.ge.s32.totalorder %s723_s14, 1  ;;  %p240_p12 = scmp.lt.s32.totalorder %s723_s14, 3 }
  0x25   : > { %p241_p13 = pnand %p530_p11, %p240_p12 }
  0x26   : > { %s827_s30 = sand.u32 (!%p241_p13), 1, %s707_s10   ;;  %v643_v16 = vld [vmem:[%s892_s0] sm:$0xff] (!%p241_p13)   ;;  %v644_v25 = vld [vmem:[%s892_s0 + $0x8] sm:$0xff] (!%p241_p13)   ;;  %s544_s20 = sshll.u32 (!%p241_p13), %s715_s12, 7 }
  0x27   : > { %244 = sbr.rel (%p241_p13) target bundleno = 305 (0x131), region = 65  ;;  %s531_s5 = sshll.u32 (!%p241_p13), %s827_s30, 6  ;;  %573 = vmatprep.mubr.bf16.mxu0 (!%p241_p13), %v643_v16 }
  0x28   : > { %s249_s6 = scalar_lea.vmem (!%p241_p13), [#allocation2], %s531_s5  ;;  %s532_s15 = sshll.u32 (!%p241_p13), %s827_s30, 5 }
  0x29   : > { %v635_v17 = vld [vmem:[%s249_s6] sm:$0xff] (!%p241_p13)   ;;  %v636_v18 = vld [vmem:[%s249_s6 + $0x8] sm:$0xff] (!%p241_p13)   ;;  %v637_v19 = vld [vmem:[%s249_s6 + $0x10] sm:$0xff] (!%p241_p13)   ;;  %s272_s16 = scalar_lea.vmem (!%p241_p13), [#allocation3], %s532_s15  ;;  %s843_s25 = scalar_lea.hbm (!%p241_p13), %s894_s2, %s544_s20 }
  0x2a   : > { %557 = vmatprep.subr.bf16.mxu0 (!%p241_p13), %v635_v17  ;;  %v638_v20 = vld [vmem:[%s249_s6 + $0x18] sm:$0xff] (!%p241_p13)   ;;  %v639_v21 = vld [vmem:[%s249_s6 + $0x20] sm:$0xff] (!%p241_p13)   ;;  %v640_v22 = vld [vmem:[%s249_s6 + $0x28] sm:$0xff] (!%p241_p13)   ;;  %s430_s18 = sshll.u32 (!%p241_p13), %s272_s16, 4  ;;  %s415_s26 = scalar_lea.sflag (!%p241_p13), [#allocation4], %s827_s30  ;;  %s838_s18 = int_to_ptr.vmem [resolvable:$true] %s430_s18 }
  0x2b   : > { %558 = vmatpush3.bf16.msra.mxu0 (!%p241_p13), %v635_v17  ;;  %v641_v23 = vld [vmem:[%s249_s6 + $0x30] sm:$0xff] (!%p241_p13)   ;;  %v642_v24 = vld [vmem:[%s249_s6 + $0x38] sm:$0xff] (!%p241_p13)   ;;  %s645_s12 = scalar_lea.vmem (!%p241_p13), %s838_s18, 512  ;;  %s725_s27 = smov (!%p241_p13), [#allocation3]  }
  0x2c   : > { %559 = vmatprep.subr.bf16.mxu0 (!%p241_p13), %v636_v18  ;;  %p646_p0 = scmp.ne.s32.totalorder (!%p241_p13), %s838_s18, %s645_s12  ;;  %s649_s28 = sshll.u32 (!%p241_p13), %s725_s27, 4  ;;  %s650_s28 = int_to_ptr.vmem [resolvable:$false] %s649_s28 }
  0x2d   : > { %s651_s29 = scalar_lea.vmem (!%p241_p13), %s650_s28, 1024  ;;  %p652_p3 = scmp.lt.s32.totalorder (!%p241_p13), %s838_s18, %s650_s28 }
  0x2e   : > { %p647_p1 = pnand %p646_p0, %p783_p5  ;;  %p653_p4 = scmp.lt.s32.totalorder %s651_s29, %s645_s12 }
  0x2f   : > { %560 = vmatpush3.bf16.msra.mxu0 %v636_v18 }
  0x30   : > { %561 = vmatprep.subr.bf16.mxu0 %v637_v19  ;;  %p648_p2 = pneg %p647_p1  ;;  %p654_p6 = por %p653_p4, %p652_p3 }
  0x32   : > { %p655_p7 = pnand %p654_p6, %p648_p2 }
  0x33   : > { %562 = vmatpush3.bf16.msra.mxu0 %v637_v19 }
  0x34   : > { %563 = vmatprep.subr.bf16.mxu0 %v638_v20 }
  0x37   : > { %564 = vmatpush3.bf16.msra.mxu0 %v638_v20 }
  0x38   : > { %565 = vmatprep.subr.bf16.mxu0 %v639_v21 }
  0x3b   : > { %566 = vmatpush3.bf16.msra.mxu0 %v639_v21 }
  0x3c   : > { %567 = vmatprep.subr.bf16.mxu0 %v640_v22 }
  0x3f   : > { %568 = vmatpush3.bf16.msra.mxu0 %v640_v22 }
  0x40   : > { %569 = vmatprep.subr.bf16.mxu0 %v641_v23 }
  0x43   : > { %570 = vmatpush3.bf16.msra.mxu0 %v641_v23 }
  0x44   : > { %571 = vmatprep.subr.bf16.mxu0 %v642_v24 }
  0x47   : > { %572 = vmatpush3.bf16.msra.mxu0 %v642_v24 }
  0x4a   : > { %574 = vmatmul.mubr.bf16.vlgmr.msra.gmra.mrb[0].mxu0 %v644_v25 }
 0x11d   : > { %v575_v26 = vpop.f32.mrb[0].mxu0 }
 0x11e   : > { %412 = vst [vmem:[%s272_s16 + $0x10] sm:$0xff] %v575_v26  ;;  %v395_v27 = vpop.f32.mrb[1].mxu0 }
 0x11f   : > { %410 = vst [vmem:[%s272_s16] sm:$0xff] %v395_v27  ;;  %v576_v28 = vpop.f32.mrb[2].mxu0 }
 0x120   : > { %413 = vst [vmem:[%s272_s16 + $0x18] sm:$0xff] %v576_v28  ;;  %v398_v29 = vpop.f32.mrb[3].mxu0 }
 0x121   : > { %411 = vst [vmem:[%s272_s16 + $0x8] sm:$0xff] %v398_v29 }
 0x122   : > { %658 = shalt.err (!%p655_p7)
}
 0x123   : > { %s659_s3 = scalar_lea.hbm %s843_s25, 512  ;;  %s663_s6 = scalar_lea.hbm %s894_s2, 1024 }
 0x124   : > { %p660_p8 = scmp.ne.s32.totalorder %s843_s25, %s659_s3  ;;  %p664_p13 = scmp.lt.u32.totalorder %s843_s25, %s894_s2 }
 0x125   : > { %p665_p0 = scmp.lt.u32.totalorder %s663_s6, %s659_s3  ;;  %p667_p2 = scmp.lt.u32.totalorder %s659_s3, %s843_s25 }
 0x126   : > { %p661_p11 = pnand %p660_p8, %p783_p5 }
 0x127   : > { %p666_p1 = por %p665_p0, %p664_p13 }
 0x128   : > { %p662_p12 = pneg %p661_p11 }
 0x129   : > { %p668_p3 = por %p667_p2, %p666_p1 }
 0x12b   : > { %p669_p4 = pnand %p668_p3, %p662_p12 }
 0x12d   : > { %672 = shalt.err (!%p669_p4)
}
 0x12e   : > { %s726_s15 = smov 128   ;;  %s727_s16 = smov 256  }
 0x12f   : > { %s728_s20 = smov 8  }
 0x130   : > { %577 = dma.vmem_to_hbm [thread:$0]  (%p783_p5), %s838_s18, 512, %s843_s25, %s415_s26, %s726_s15, %s727_s16, %s728_s20  }
 0x131 PF: > { %s445_s23 = sand.u32 1, %s703_s9   ;;  %p580_p6 = pnand %p527_p10, %p794_p9 }
 0x132   : > { %s446_s24 = scalar_lea.sflag [#allocation4], %s445_s23 }
 0x133   : > { %698 = dma.done.wait (!%p580_p6), %s446_s24, 512  }
 0x134   : > { %700 = vsyncadd (!%p580_p6), %s446_s24, 4294966784  ;;  %s15_s14 = sadd.s32 1, %s723_s14   ;;  %s897_s9 = smov %s707_s10 }
 0x135   : > { %p12_p7 = scmp.ge.s32.totalorder %s15_s14, 4   ;;  %s898_s10 = smov %s711_s11 }
 0x136   : > { %s899_s11 = smov %s792_s21  ;;  %s900_s12 = smov %s719_s13 }
 0x137   : > { %s901_s13 = smov %s903_s17  ;;  %14 = sbr.rel (!%p12_p7) target bundleno = 4 (0x4), region = 112 }
 0x13e   :  { %451 = vsyncpa [#allocation4], 1 }
 0x13f   :  { %453 = vsyncpa [#allocation4 + $0x1], 1 }

// kernel: gpt2_forward.2
= control target key start
LH: loop header
LB: loop body
LE: loop exit
PB: predicated region body
PF: predicated region fallthrough
CT: control target
= control target key end

     0   :  { %s4178_s0 = inlined_call_operand.vmem [shape: f32[16,16], index: 0, kind: input, shape index: {}]   ;;  %s4179_s1 = inlined_call_operand.vmem [shape: bf16[2,16,128], index: 1, kind: input, shape index: {}]   ;;  %s4180_s2 = inlined_call_operand.vmem [shape: bf16[2,128,384], index: 2, kind: input, shape index: {}]   ;;  %s4181_s3 = inlined_call_operand.vmem [shape: f32[2,1,384], index: 3, kind: input, shape index: {}]   ;;  %s4182_s4 = inlined_call_operand.hbm [shape: bf16[2,128,128], index: 4, kind: input, shape index: {}]   ;;  %s4183_s5 = inlined_call_operand.vmem [shape: f32[2,1,128], index: 5, kind: input, shape index: {}]   ;;  %s4184_s6 = inlined_call_operand.vmem [shape: f32[2,1,128], index: 6, kind: input, shape index: {}]   ;;  %s4185_s7 = inlined_call_operand.vmem [shape: f32[2,1,128], index: 7, kind: input, shape index: {}]   ;;  %s4186_s8 = inlined_call_operand.hbm [shape: bf16[2,128,512], index: 8, kind: input, shape index: {}]   ;;  %s4187_s9 = inlined_call_operand.vmem [shape: f32[2,1,512], index: 9, kind: input, shape index: {}]   ;;  %s4188_s10 = inlined_call_operand.hbm [shape: bf16[2,512,128], index: 10, kind: input, shape index: {}]   ;;  %s4189_s11 = inlined_call_operand.vmem [shape: f32[2,1,128], index: 11, kind: input, shape index: {}]   ;;  %s4190_s12 = inlined_call_operand.vmem [shape: f32[2,1,128], index: 12, kind: input, shape index: {}]   ;;  %s4191_s13 = inlined_call_operand.vmem [shape: f32[2,1,128], index: 13, kind: input, shape index: {}]   ;;  %s4192_s14 = inlined_call_operand.vmem [shape: f32[1,128], index: 14, kind: input, shape index: {}]   ;;  %s4193_s15 = inlined_call_operand.vmem [shape: f32[1,128], index: 15, kind: input, shape index: {}]   ;;  %s4194_s16 = inlined_call_operand.vmem [shape: bf16[2,16,128], index: 16, kind: output, shape index: {}]  }
   0x1   :  { %4206 = sst [smem:[#allocation18_spill]] %s4178_s0 }
   0x2   :  { %4207 = sst [smem:[#allocation19_spill]] %s4179_s1 }
   0x3   :  { %4208 = sst [smem:[#allocation20_spill]] %s4180_s2 }
   0x4   :  { %4209 = sst [smem:[#allocation21_spill]] %s4181_s3 }
   0x5   :  { %4210 = sst [smem:[#allocation22_spill]] %s4182_s4 }
   0x6   :  { %4211 = sst [smem:[#allocation23_spill]] %s4184_s6 }
   0x7   :  { %4212 = sst [smem:[#allocation24_spill]] %s4185_s7 }
   0x8   :  { %4213 = sst [smem:[#allocation25_spill]] %s4186_s8 }
   0x9   :  { %4214 = sst [smem:[#allocation26_spill]] %s4187_s9 }
   0xa   :  { %4215 = sst [smem:[#allocation27_spill]] %s4188_s10 }
   0xb   :  { %4216 = sst [smem:[#allocation28_spill]] %s4189_s11 }
   0xc   :  { %4217 = sst [smem:[#allocation29_spill]] %s4190_s12 }
   0xd   :  { %4218 = sst [smem:[#allocation30_spill]] %s4191_s13 }
   0xe   :  { %4219 = sst [smem:[#allocation31_spill]] %s4192_s14 }
   0xf   :  { %4220 = sst [smem:[#allocation32_spill]] %s4193_s15 }
  0x10   :  { %4221 = sst [smem:[#allocation33_spill]] %s4194_s16 }
  0x11   :  { %21 = vsyncpa [#allocation4], 0 }
  0x12   :  { %23 = vsyncpa [#allocation4 + $0x1], 0 }
  0x13   :  { %24 = vsyncpa [#allocation6], 0 }
  0x14   :  { %26 = vsyncpa [#allocation6 + $0x1], 0  ;;  %s3576_s21 = smov 0   ;;  %s3578_s22 = smov 0  }
  0x15   :  { %s3580_s23 = smov 0   ;;  %s3582_s24 = smov 0  }
  0x16   :  { %s3584_s25 = smov 0   ;;  %s3586_s26 = smov 0  }
  0x17   :  { %s3588_s27 = smov 0   ;;  %s3590_s28 = smov 0  }
  0x18 LB: > { %4222 = sst [smem:[#allocation10_spill]] %s3452_s22  ;;  %s4198_s29 = sadd.s32 4294967295, %s3476_s28   ;;  %s3476_s28 = sphi %s3590_s28, %s32_s28   ;;  %s3472_s27 = sphi %s3588_s27, %s4271_s27   ;;  %s3468_s26 = sphi %s3586_s26, %s4270_s26   ;;  %s3464_s25 = sphi %s3584_s25, %s4269_s25   ;;  %s3460_s24 = sphi %s3582_s24, %s4268_s24   ;;  %s3456_s23 = sphi %s3580_s23, %s4267_s23   ;;  %s3452_s22 = sphi %s3578_s22, %s4266_s22   ;;  %s3448_s21 = sphi %s3576_s21, %s4265_s21  }
  0x19   : > { %4223 = sst [smem:[#allocation11_spill]] %s3456_s23  ;;  %s41_s30 = sadd.s32 1, %s3468_s26 }
  0x1a   : > { %4224 = sst [smem:[#allocation12_spill]] %s3468_s26  ;;  %p42_p0 = scmp.ge.s32.totalorder %s41_s30, 2 }
  0x1b   : > { %4225 = sst [smem:[#allocation13_spill]] %s3472_s27  ;;  %s44_s0 = sadd.s32 1, %s3472_s27 }
  0x1c   : > { %4226 = sst [smem:[#allocation14_spill]] %s3476_s28  ;;  %s150_s17 = sadd.s32 1, %s3456_s23 }
  0x1d   : > { %p157_p1 = scmp.ne.s32.totalorder %s3456_s23, %s3452_s22  ;;  %s4273_s30 = smov (%p42_p0, %s41_s30), 0 }
  0x1e   : > { %4227 = sst [smem:[#allocation15_spill]] %s4273_s30  ;;  %s4275_s0 = smov (!%p42_p0, %s44_s0), %s3472_s27 }
  0x1f   : > { %s147_s18 = ssub.s32 %s3468_s26, %s4273_s30  ;;  %p158_p2 = scmp.eq.s32.totalorder %s3476_s28, 0 }
  0x20   : > { %p46_p3 = scmp.ge.s32.totalorder %s4275_s0, 2  ;;  %p148_p4 = scmp.eq.s32.totalorder %s147_s18, 0 }
  0x21   : > { %p159_p5 = por %p158_p2, %p157_p1  ;;  %p163_p6 = scmp.ne.s32.totalorder %s3452_s22, %s3448_s21 }
  0x22   : > { %s4277_s0 = smov (%p46_p3, %s4275_s0), 0  ;;  %p164_p7 = scmp.eq.s32.totalorder %s4198_s29, 0 }
  0x23   : > { %4228 = sst [smem:[#allocation16_spill]] %s4277_s0  ;;  %p3061_p8 = scmp.lt.s32.totalorder %s3476_s28, 4 }
  0x24   : > { %s3630_s19 = scalar_select %p148_p4, %s3456_s23, %s150_s17  }
  0x25   : > { %s3636_s20 = sand.u32 1, %s3456_s23   ;;  %p3638_p9 = por %p164_p7, %p163_p6 }
  0x26   : > { %4229 = sst [smem:[#allocation17_spill]] %s3630_s19  ;;  %s560_s30 = sand.u32 1, %s3476_s28  }
  0x27   : > { %s4230_s27 = scalar_select %p3638_p9, 1, 0 }
  0x28   : > { %p3643_p10 = pnand %p3061_p8, %p159_p5  ;;  %s4200_s21 = sshll.u32 %s3636_s20, 8 }
  0x29   : > { %s4201_s17 = sshll.u32 %s3468_s26, 12  ;;  %s4232_s8 = sld [smem:[#allocation25_spill]] }
  0x2a   : > { %s564_s23 = scalar_lea.vmem [#allocation5], %s4200_s21  ;;  %s3660_s14 = scalar_lea.sflag [#allocation6], %s560_s30 }
  0x2b   : > { %s571_s15 = sshll.u32 %s564_s23, 4  ;;  %p3666_p12 = pneg %p3643_p10  ;;  %s3658_s15 = int_to_ptr.vmem [resolvable:$true] %s571_s15 }
  0x2f   : > { %s3654_s19 = scalar_lea.hbm %s4232_s8, %s4201_s17  ;;  %s3321_s21 = scalar_lea.hbm %s4232_s8, 8192 }
  0x30   : > { %s3316_s16 = scalar_lea.hbm %s3654_s19, 4096  ;;  %p3322_p1 = scmp.lt.u32.totalorder %s3654_s19, %s4232_s8 }
  0x31   : > { %p3317_p11 = scmp.ne.s32.totalorder %s3654_s19, %s3316_s16  ;;  %p3323_p2 = scmp.lt.u32.totalorder %s3321_s21, %s3316_s16 }
  0x32   : > { %p3325_p4 = scmp.lt.u32.totalorder %s3316_s16, %s3654_s19 }
  0x33   : > { %p3319_p13 = pnand %p3666_p12, %p3317_p11  ;;  %p3324_p3 = por %p3323_p2, %p3322_p1 }
  0x35   : > { %p3320_p0 = pneg %p3319_p13  ;;  %p3326_p5 = por %p3325_p4, %p3324_p3 }
  0x37   : > { %p3327_p6 = pnand %p3326_p5, %p3320_p0 }
  0x39   : > { %3330 = shalt.err (!%p3327_p6)
}
  0x3a   : > { %s3331_s30 = scalar_lea.vmem %s3658_s15, 4096  ;;  %s3478_s29 = smov [#allocation5]  }
  0x3b   : > { %p3332_p7 = scmp.ne.s32.totalorder %s3658_s15, %s3331_s30  ;;  %s3336_s0 = sshll.u32 %s3478_s29, 4  ;;  %s3337_s0 = int_to_ptr.vmem [resolvable:$false] %s3336_s0 }
  0x3c   : > { %s3338_s17 = scalar_lea.vmem %s3337_s0, 8192  ;;  %p3339_p13 = scmp.lt.s32.totalorder %s3658_s15, %s3337_s0 }
  0x3d   : > { %p3334_p8 = pnand %p3332_p7, %p3666_p12  ;;  %p3340_p9 = scmp.lt.s32.totalorder %s3338_s17, %s3331_s30 }
  0x3f   : > { %p3335_p11 = pneg %p3334_p8  ;;  %p3341_p1 = por %p3340_p9, %p3339_p13 }
  0x41   : > { %p3342_p2 = pnand %p3341_p1, %p3335_p11 }
  0x43   : > { %3345 = shalt.err (!%p3342_p2)
}
  0x44   : > { %s3479_s16 = smov 256   ;;  %s3480_s21 = smov 16  }
  0x45   : > { %3057 = dma.hbm_to_vmem [thread:$0]  (!%p3643_p10), %s3654_s19, 4096, %s3658_s15, %s3660_s14, %s3479_s16, %s3479_s16, %s3480_s21  }
  0x46   : > { %s4234_s23 = sshll.u32 %s3468_s26, 12  ;;  %s4235_s10 = sld [smem:[#allocation27_spill]] }
  0x47   : > { %s4236_s17 = sshll.u32 %s3636_s20, 8  ;;  %p2736_p9 = scmp.ge.s32.totalorder %s3476_s28, 1 }
  0x48   : > { %s592_s8 = scalar_lea.vmem [#allocation7], %s4236_s17  ;;  %p625_p0 = scmp.lt.s32.totalorder %s3476_s28, 5 }
  0x49   : > { %s599_s12 = sshll.u32 %s592_s8, 4  ;;  %s2727_s11 = sshll.u32 %s3636_s20, 6  ;;  %s3699_s12 = int_to_ptr.vmem [resolvable:$true] %s599_s12 }
  0x4a   : > { %p3703_p3 = pnand %p2736_p9, %p625_p0  ;;  %s2865_s15 = sshll.u32 %s3468_s26, 10 }
  0x4b   : > { %s4238_s4 = sld [smem:[#allocation22_spill]]  ;;  %s525_s8 = scalar_lea.vmem [#allocation3], %s2727_s11 }
  0x4c   : > { %s3695_s0 = scalar_lea.hbm %s4235_s10, %s4234_s23  ;;  %s532_s23 = sshll.u32 %s525_s8, 4  ;;  %s3714_s23 = int_to_ptr.vmem [resolvable:$true] %s532_s23 }
  0x4d   : > { %s4237_s9 = scalar_select %p3703_p3, 1, 0 }
  0x4e   : > { %s522_s30 = scalar_lea.sflag [#allocation4], %s3636_s20 }
  0x51   : > { %s3712_s21 = scalar_lea.hbm %s4238_s4, %s2865_s15  ;;  %s3351_s19 = scalar_lea.hbm %s4238_s4, 2048 }
  0x52   : > { %s3346_s29 = scalar_lea.hbm %s3712_s21, 1024  ;;  %p3352_p7 = scmp.lt.u32.totalorder %s3712_s21, %s4238_s4 }
  0x53   : > { %p3347_p4 = scmp.ne.s32.totalorder %s3712_s21, %s3346_s29  ;;  %p3353_p8 = scmp.lt.u32.totalorder %s3351_s19, %s3346_s29 }
  0x54   : > { %p3355_p13 = scmp.lt.u32.totalorder %s3346_s29, %s3712_s21 }
  0x55   : > { %p3349_p5 = pnand %p3347_p4, %p3666_p12  ;;  %p3354_p11 = por %p3353_p8, %p3352_p7 }
  0x57   : > { %p3350_p6 = pneg %p3349_p5  ;;  %p3356_p1 = por %p3355_p13, %p3354_p11 }
  0x59   : > { %p3357_p2 = pnand %p3356_p1, %p3350_p6 }
  0x5b   : > { %3360 = shalt.err (!%p3357_p2)
}
  0x5c   : > { %s3361_s11 = scalar_lea.vmem %s3714_s23, 1024  ;;  %s3481_s26 = smov [#allocation3]  }
  0x5d   : > { %p3362_p9 = scmp.ne.s32.totalorder %s3714_s23, %s3361_s11  ;;  %s3366_s8 = sshll.u32 %s3481_s26, 4  ;;  %s3367_s8 = int_to_ptr.vmem [resolvable:$false] %s3366_s8 }
  0x5e   : > { %s3368_s17 = scalar_lea.vmem %s3367_s8, 2048  ;;  %p3369_p5 = scmp.lt.s32.totalorder %s3714_s23, %s3367_s8 }
  0x5f   : > { %p3364_p0 = pnand %p3362_p9, %p3666_p12  ;;  %p3370_p3 = scmp.lt.s32.totalorder %s3368_s17, %s3361_s11 }
  0x61   : > { %p3365_p4 = pneg %p3364_p0  ;;  %p3371_p7 = por %p3370_p3, %p3369_p5 }
  0x63   : > { %p3372_p8 = pnand %p3371_p7, %p3365_p4 }
  0x65   : > { %3375 = shalt.err (!%p3372_p8)
}
  0x66   : > { %s3482_s29 = smov 64   ;;  %s3483_s19 = smov 4  }
  0x67   : > { %3054 = dma.hbm_to_vmem [thread:$0]  (!%p3643_p10), %s3712_s21, 1024, %s3714_s23, %s522_s30, %s3482_s29, %s3482_s29, %s3483_s19  }
  0x68   : > { %s3376_s15 = scalar_lea.hbm %s3695_s0, 4096  ;;  %s3381_s26 = scalar_lea.hbm %s4235_s10, 8192 }
  0x69   : > { %p3377_p3 = scmp.ne.s32.totalorder %s3695_s0, %s3376_s15  ;;  %p3382_p13 = scmp.lt.u32.totalorder %s3695_s0, %s4235_s10 }
  0x6a   : > { %p3383_p1 = scmp.lt.u32.totalorder %s3381_s26, %s3376_s15  ;;  %p3385_p9 = scmp.lt.u32.totalorder %s3376_s15, %s3695_s0 }
  0x6b   : > { %p3379_p6 = pnand %p3377_p3, %p3666_p12 }
  0x6c   : > { %p3384_p2 = por %p3383_p1, %p3382_p13 }
  0x6d   : > { %p3380_p11 = pneg %p3379_p6 }
  0x6e   : > { %p3386_p0 = por %p3385_p9, %p3384_p2 }
  0x70   : > { %p3387_p4 = pnand %p3386_p0, %p3380_p11 }
  0x72   : > { %3390 = shalt.err (!%p3387_p4)
}
  0x73   : > { %s3391_s20 = scalar_lea.vmem %s3699_s12, 4096  ;;  %s3484_s21 = smov [#allocation7]  }
  0x74   : > { %p3392_p5 = scmp.ne.s32.totalorder %s3699_s12, %s3391_s20  ;;  %s3396_s23 = sshll.u32 %s3484_s21, 4  ;;  %s3397_s23 = int_to_ptr.vmem [resolvable:$false] %s3396_s23 }
  0x75   : > { %s3398_s30 = scalar_lea.vmem %s3397_s23, 8192  ;;  %p3399_p3 = scmp.lt.s32.totalorder %s3699_s12, %s3397_s23 }
  0x76   : > { %p3394_p7 = pnand %p3392_p5, %p3666_p12  ;;  %p3400_p6 = scmp.lt.s32.totalorder %s3398_s30, %s3391_s20 }
  0x78   : > { %p3395_p8 = pneg %p3394_p7  ;;  %p3401_p13 = por %p3400_p6, %p3399_p3 }
  0x7a   : > { %p3402_p1 = pnand %p3401_p13, %p3395_p8 }
  0x7c   : > { %3405 = shalt.err (!%p3402_p1)
}
  0x7d   : > { %3060 = dma.hbm_to_vmem [thread:$0]  (!%p3643_p10), %s3695_s0, 4096, %s3699_s12, %s3660_s14, %s3482_s29, %s3482_s29, %s3483_s19  }
  0x7e   : > { %p4239_p12 = scmp.ne.s32.totalorder %s4237_s9, 0 }
  0x7f   : > { %s3771_s13 = sand.u32 (!%p4239_p12), 1, %s3452_s22   ;;  %p4240_p11 = scmp.ne.s32.totalorder (!%p4239_p12), %s4230_s27, 0 }
  0x80   : > { %629 = sbr.rel (%p4239_p12) target bundleno = 3140 (0xc44), region = 84  ;;  %s2737_s15 = sshll.u32 (!%p4239_p12), %s3771_s13, 6 }
  0x81   : > { %s632_s16 = scalar_lea.sflag (!%p4239_p12), [#allocation4], %s3771_s13  ;;  %s3775_s11 = scalar_lea.vmem (!%p4239_p12), [#allocation3], %s2737_s15 }
  0x87   : > { %3439 = dma.done.wait (%p4240_p11), %s632_s16, 1024  }
  0x88   : > { %3441 = vsyncadd (%p4240_p11), %s632_s16, 4294966272  ;;  %s4241_s12 = sadd.s32 4294967295, %s3476_s28   ;;  %s2738_s14 = sshll.u32 %s3771_s13, 8 }
  0x89   : > { %s640_s9 = sand.u32 1, %s4241_s12   ;;  %s3784_s0 = scalar_lea.vmem [#allocation5], %s2738_s14 }
  0x8a   : > { %s641_s18 = scalar_lea.sflag [#allocation6], %s640_s9 }
  0x8b   : > { %3443 = dma.done.wait (%p4240_p11), %s641_s18, 8192  }
  0x8c   : > { %3445 = vsyncadd (%p4240_p11), %s641_s18, 4294959104  ;;  %p748_p10 = scmp.lt.s32.totalorder %s3464_s25, 1  ;;  %p753_p2 = scmp.lt.s32.totalorder %s3460_s24, 1 }
  0x8d   : > { %s4242_s1 = sld [smem:[#allocation19_spill]]  ;;  %s4243_s2 = sld [smem:[#allocation20_spill]] }
  0x8e   : > { %s4279_s25 = smov (!%p748_p10, %s3464_s25), 1  ;;  %s4245_s3 = sld [smem:[#allocation21_spill]] }
  0x8f   : > { %s3794_s29 = scalar_select %p753_p2, %s3460_s24, 1 }
  0x90   : > { %s2868_s27 = sshll.u32 %s4279_s25, 3  ;;  %s4247_s22 = sld [smem:[#allocation28_spill]] }
  0x91   : > { %s3043_s17 = smul.u32 192, %s3794_s29  ;;  %s2743_s21 = sshll.u32 %s3794_s29, 2 }
  0x92   : > { %s3044_s20 = smul.u32 3, %s3794_s29  ;;  %s4249_s18 = sld [smem:[#allocation29_spill]] }
  0x93   : > { %s752_s8 = scalar_lea.vmem %s4242_s1, %s2868_s27  ;;  %s3808_s16 = scalar_lea.vmem %s4243_s2, %s3043_s17 }
  0x94   : > { %s3817_s19 = scalar_lea.vmem %s4245_s3, %s3044_s20  ;;  %s4248_s2 = sld [smem:[#allocation26_spill]] }
  0x95   : > { %s4250_s3 = sld [smem:[#allocation30_spill]]  ;;  %s4251_s10 = sld [smem:[#allocation33_spill]] }
  0x96   : > { %s777_s13 = scalar_lea.vmem %s4247_s22, %s3794_s29  ;;  %s3846_s30 = scalar_lea.vmem [#allocation7], %s2738_s14 }
  0x97   : > { %p2746_p9 = scmp.ne.s32.totalorder %s3460_s24, 0 }
  0x98   : > { %s780_s4 = scalar_lea.vmem %s4249_s18, %s3794_s29  ;;  %v3136_v0 = vld [vmem:[%s752_s8] sm:$0xff] (!%p2746_p9)  }
  0x99   : > { %793 = sbr.rel (%p2746_p9) target bundleno = 160 (0xa0), region = 100  ;;  %802 = vst [vmem:[#allocation2] sm:$0xff] (!%p2746_p9), %v3136_v0 }
  0x9a   : > { %s3831_s28 = scalar_lea.vmem %s4248_s2, %s2743_s21 }
  0x9b   : > { %s783_s6 = scalar_lea.vmem %s4250_s3, %s3794_s29  ;;  %s3844_s7 = scalar_lea.vmem %s4251_s10, %s2868_s27 }
  0xa0 PF: > { %v3152_v1 = vld [vmem:[%s3808_s16 + $0x4] ss:$12 sps:$4 sm:$0xff]   ;;  %v3154_v2 = vld [vmem:[%s3808_s16] ss:$12 sps:$4 sm:$0xff]   ;;  %v3485_v3 = vmov 0   ;;  %v3486_v4 = vmov 0.0   ;;  %v838_v28 = vlaneseq  ;;  %s4254_s21 = scalar_lea.vmem %s4183_s5, %s3794_s29 }
  0xa1   : > { %1013 = vmatprep.mubr.bf16.mxu0 %v3485_v3  ;;  %2955 = vmatprep.subr.bf16.mxu1 %v3486_v4  ;;  %v3155_v5 = vld [vmem:[%s3808_s16 + $0x1c] ss:$12 sps:$4 sm:$0xff]   ;;  %v3157_v6 = vld [vmem:[%s3808_s16 + $0x18] ss:$12 sps:$4 sm:$0xff]   ;;  %v3158_v7 = vld [vmem:[%s3808_s16 + $0x34] ss:$12 sps:$4 sm:$0xff]  }
  0xa2   : > { %981 = vmatprep.subr.bf16.mxu0 %v3152_v1  ;;  %v3160_v8 = vld [vmem:[%s3808_s16 + $0x30] ss:$12 sps:$4 sm:$0xff]   ;;  %v3161_v9 = vld [vmem:[%s3808_s16 + $0x4c] ss:$12 sps:$4 sm:$0xff]   ;;  %v3163_v10 = vld [vmem:[%s3808_s16 + $0x48] ss:$12 sps:$4 sm:$0xff]  }
  0xa3   : > { %982 = vmatpush1.bf16.msra.mxu0 %v3154_v2  ;;  %v3176_v11 = vld [vmem:[%s3808_s16 + $0x8] ss:$12 sps:$4 sm:$0xff]   ;;  %v3164_v12 = vld [vmem:[%s3808_s16 + $0x64] ss:$12 sps:$4 sm:$0xff]   ;;  %v3177_v13 = vld [vmem:[%s3808_s16 + $0x20] ss:$12 sps:$4 sm:$0xff]  }
  0xa4   : > { %983 = vmatprep.subr.bf16.mxu0 %v3155_v5  ;;  %2956 = vmatpush3.bf16.msra.mxu1 %v3176_v11  ;;  %v3166_v14 = vld [vmem:[%s3808_s16 + $0x60] ss:$12 sps:$4 sm:$0xff]   ;;  %v3167_v15 = vld [vmem:[%s3808_s16 + $0x7c] ss:$12 sps:$4 sm:$0xff]   ;;  %v3169_v16 = vld [vmem:[%s3808_s16 + $0x78] ss:$12 sps:$4 sm:$0xff]  }
  0xa5   : > { %2957 = vmatprep.subr.bf16.mxu1 %v3486_v4  ;;  %v3178_v17 = vld [vmem:[%s3808_s16 + $0x38] ss:$12 sps:$4 sm:$0xff]   ;;  %v3170_v18 = vld [vmem:[%s3808_s16 + $0x94] ss:$12 sps:$4 sm:$0xff]   ;;  %v3179_v19 = vld [vmem:[%s3808_s16 + $0x50] ss:$12 sps:$4 sm:$0xff]  }
  0xa6   : > { %v3172_v20 = vld [vmem:[%s3808_s16 + $0x90] ss:$12 sps:$4 sm:$0xff]   ;;  %v3173_v21 = vld [vmem:[%s3808_s16 + $0xac] ss:$12 sps:$4 sm:$0xff]   ;;  %v3180_v22 = vld [vmem:[%s3808_s16 + $0x68] ss:$12 sps:$4 sm:$0xff]  }
  0xa7   : > { %984 = vmatpush1.bf16.msra.mxu0 %v3157_v6  ;;  %v3175_v23 = vld [vmem:[%s3808_s16 + $0xa8] ss:$12 sps:$4 sm:$0xff]   ;;  %v3181_v24 = vld [vmem:[%s3808_s16 + $0x80] ss:$12 sps:$4 sm:$0xff]   ;;  %v3182_v26 = vld [vmem:[%s3808_s16 + $0x98] ss:$12 sps:$4 sm:$0xff]  }
  0xa8   : > { %985 = vmatprep.subr.bf16.mxu0 %v3158_v7  ;;  %2958 = vmatpush3.bf16.msra.mxu1 %v3177_v13  ;;  %v3877_v25 = vld [vmem:[#allocation2] sm:$0xff]  ;;  %v3183_v27 = vld [vmem:[%s3808_s16 + $0xb0] ss:$12 sps:$4 sm:$0xff]   ;;  %vm3487_vm0 = vmmov 0   ;;  %v3894_v29 = vshrl.u32 %v838_v28, 7  ;;  %vm1072_vm1 = vcmask 261120  }
  0xa9   : > { %2959 = vmatprep.subr.bf16.mxu1 %v3486_v4  ;;  %2971 = vmatprep.mubr.msk.bf16.mxu1 %vm3487_vm0, %v3486_v4  ;;  %v836_v31 = vld [vmem:[%s3817_s19] sm:$0x7]  ;;  %s3488_s2 = smov 96   ;;  %s3489_s3 = smov 64   ;;  %vm1120_vm2 = vcmask 130048   ;;  %vm1580_vm3 = vcmask 523264  }
  0xaa   : > { %v840_v30 = vsub.s32 0, %v3894_v29  ;;  %v844_v32 = vsub.s32 1, %v3894_v29  ;;  %s3490_s10 = smov 32   ;;  %v848_v48 = vsub.s32 2, %v3894_v29  ;;  %s4252_s27 = sld [smem:[#allocation18_spill]]  ;;  %vm1583_vm4 = vcmask 785408  }
  0xab   : > { %986 = vmatpush1.bf16.msra.mxu0 %v3160_v8  ;;  %s4255_s17 = sld [smem:[#allocation23_spill]]  ;;  %s4257_s20 = sld [smem:[#allocation24_spill]] }
  0xac   : > { %987 = vmatprep.subr.bf16.mxu0 %v3161_v9  ;;  %2960 = vmatpush3.bf16.msra.mxu1 %v3178_v17  ;;  %v841_v33 = vrot.slane %v836_v31, %v840_v30  ;;  %v845_v35 = vrot.slane %v836_v31, %v844_v32  ;;  %v849_v49 = vrot.slane %v836_v31, %v848_v48  ;;  %p2858_p0 = scmp.ne.s32.totalorder %s3460_s24, 1 }
  0xad   : > { %2961 = vmatprep.subr.bf16.mxu1 %v3486_v4 }
  0xaf   : > { %988 = vmatpush1.bf16.msra.mxu0 %v3163_v10 }
  0xb0   : > { %989 = vmatprep.subr.bf16.mxu0 %v3164_v12  ;;  %2962 = vmatpush3.bf16.msra.mxu1 %v3179_v19  ;;  %s4253_s8 = smov %s4252_s27  ;;  %v3923_v57 = vld [vmem:[%s4252_s27] sm:$0xff]  ;;  %s4263_s27 = sld [smem:[#allocation32_spill]] (!%p2858_p0) }
  0xb1   : > { %2963 = vmatprep.subr.bf16.mxu1 %v3486_v4  ;;  %v3928_v59 = vld [vmem:[%s4253_s8 + $0x8] sm:$0xff]  ;;  %s4256_s15 = scalar_lea.vmem %s4255_s17, %s3794_s29  ;;  %s4258_s25 = scalar_lea.vmem %s4257_s20, %s3794_s29 }
  0xb2   : > { %s4262_s29 = sld [smem:[#allocation31_spill]] (!%p2858_p0) }
  0xb3   : > { %990 = vmatpush1.bf16.msra.mxu0 %v3166_v14 }
  0xb4   : > { %991 = vmatprep.subr.bf16.mxu0 %v3167_v15  ;;  %2964 = vmatpush3.bf16.msra.mxu1 %v3180_v22 }
  0xb5   : > { %2965 = vmatprep.subr.bf16.mxu1 %v3486_v4 }
  0xb7   : > { %992 = vmatpush1.bf16.msra.mxu0 %v3169_v16 }
  0xb8   : > { %993 = vmatprep.subr.bf16.mxu0 %v3170_v18  ;;  %2966 = vmatpush3.bf16.msra.mxu1 %v3181_v24 }
  0xb9   : > { %2967 = vmatprep.subr.bf16.mxu1 %v3486_v4 }
  0xbb   : > { %994 = vmatpush1.bf16.msra.mxu0 %v3172_v20 }
  0xbc   : > { %995 = vmatprep.subr.bf16.mxu0 %v3173_v21  ;;  %2968 = vmatpush3.bf16.msra.mxu1 %v3182_v26 }
  0xbd   : > { %2969 = vmatprep.subr.bf16.mxu1 %v3486_v4 }
  0xbf   : > { %996 = vmatpush1.bf16.msra.mxu0 %v3175_v23 }
  0xc0   : > { %2999 = vmatprep.subr.bf16.mxu0 %v3486_v4  ;;  %2970 = vmatpush3.bf16.msra.mxu1 %v3183_v27 }
  0xc1   : > { %2975 = vmatprep.subr.bf16.mxu1 %v3486_v4 }
  0xc2   : > { %1014 = vmatmul.mubr.bf16.vlgmr.msra.gmra.mrb[0].mxu0 %v3877_v25 }
  0xc3   : > { %3001 = vmatprep.mubr.msk.bf16.mxu0 %vm3487_vm0, %v3486_v4  ;;  %2972 = vmatmul.mubr.bf16.vlgmr.msra.gmra.mrb[0].mxu1 %v3877_v25 }
  0xc4   : > { %2977 = vmatprep.mubr.msk.bf16.mxu1 %vm3487_vm0, %v3486_v4 }
 0x195   : > { %v1015_v34 = vpop.f32.mrb[0].mxu0 }
 0x196   : > { %v1016_v36 = vadd.f32 %v1015_v34, %v841_v33  ;;  %v1017_v37 = vpop.f32.mrb[1].mxu0  ;;  %v1058_v50 = vpop.f32.mrb[0].mxu1 }
 0x197   : > { %v1019_v38 = vpop.f32.mrb[2].mxu0  ;;  %v1018_v41 = vadd.f32 %v1017_v37, %v845_v35  ;;  %v1059_v51 = vadd.f32 %v1058_v50, %v849_v49  ;;  %v2973_v52 = vpop.f32.mrb[1].mxu1 }
 0x198   : > { %v1020_v39 = vadd.f32 %v1019_v38, %v841_v33  ;;  %v1021_v40 = vpop.f32.mrb[3].mxu0  ;;  %v1065_v43 = vmul.f32 0.17677669, %v1016_v36  ;;  %v1061_v53 = vpop.f32.mrb[2].mxu1 }
 0x199   : > { %v1022_v42 = vadd.f32 %v1021_v40, %v845_v35  ;;  %v1062_v54 = vadd.f32 %v1061_v53, %v849_v49  ;;  %v2974_v55 = vpop.f32.mrb[3].mxu1 }
 0x19a   : > { %v1066_v44 = vmul.f32 0.17677669, %v1020_v39 }
 0x19b   : > { %v1068_v45 = vpack.c.bf16 %v1022_v42, %v1018_v41  ;;  %v3916_v56 = vpack.c.bf16 %v1062_v54, %v1059_v51 }
 0x19c   : > { %v1067_v46 = vpack.c.bf16 %v1066_v44, %v1065_v43 }
 0x19d   : > { %1192 = vrot.lane.b32.xlu1 %v1068_v45, %s3488_s2  ;;  %v1077_v47 = vsel %vm1072_vm1, %v1068_v45, 0 }
 0x19e   : > { %2976 = vmatpush3.bf16.xpose.msra.mxu1 %v1077_v47 }
 0x19f   : > { %2981 = vmatprep.subr.bf16.mxu1 %v3486_v4 }
 0x1a1   : > { %1189 = vrot.lane.b32.xlu1 %v1067_v46, %s3488_s2 }
 0x1a5   : > { %1312 = vrot.lane.b32.xlu1 %v1067_v46, %s3489_s3  ;;  %2978 = vmatmul.mubr.msk.bf16.vlgmr.msra.gmra.mrb[4].mxu1 %vm1072_vm1, %v1067_v46 }
 0x1a6   : > { %2983 = vmatprep.mubr.msk.bf16.mxu1 %vm3487_vm0, %v3486_v4  ;;  %2982 = vmatpush3.bf16.msra.mxu1 %v3916_v56 }
 0x1a7   : > { %2987 = vmatprep.subr.bf16.mxu1 %v3486_v4 }
 0x1a9   : > { %1435 = vrot.lane.b32.xlu1 %v1068_v45, %s3490_s10 }
 0x1ad   : > { %1433 = vrot.lane.b32.xlu1 %v1067_v46, %s3490_s10 }
 0x20f   : > { %v1193_v5 = vpop.permute.xlu1 %1192 }
 0x210   : > { %v1198_v21 = vsel %vm1072_vm1, %v1193_v5, 0 }
 0x213   : > { %v1190_v8 = vpop.permute.xlu1 %1189 }
 0x217   : > { %v1313_v13 = vpop.permute.xlu1 %1312 }
 0x21b   : > { %v1436_v16 = vpop.permute.xlu1 %1435 }
 0x21c   : > { %v1441_v17 = vsel %vm1072_vm1, %v1436_v16, 0 }
 0x21f   : > { %v1434_v22 = vpop.permute.xlu1 %1433 }
 0x278   : > { %v1113_v58 = vpop.f32.mrb[4].mxu1 }
 0x279   : > { %v1114_v60 = vadd.f32 %v1113_v58, %v3923_v57  ;;  %v2979_v61 = vpop.f32.mrb[5].mxu1 }
 0x27a   : > { %v1116_v62 = vpop.f32.mrb[6].mxu1 }
 0x27b   : > { %v1117_v63 = vadd.f32 %v1116_v62, %v3928_v59  ;;  %v2980_v0 = vpop.f32.mrb[7].mxu1  ;;  %v1121_v1 = vsel %vm1120_vm2, %v1114_v60, -inf }
 0x27c   : > { %1122 = vmax.xlane.f32.xlu0 %v1121_v1 }
 0x27d   : > { %v1124_v2 = vsel %vm1120_vm2, %v1117_v63, -inf }
 0x280   : > { %1125 = vmax.xlane.f32.xlu0 %v1124_v2 }
 0x296   : > { %1314 = vrot.lane.b32.xlu0 %v1068_v45, %s3489_s3 }
 0x309   : > { %v1123_v6 = vpop.xlane.xlu0 %1122 }
 0x30a   : > { %v1127_v7 = vsub.f32 %v1114_v60, %v1123_v6 }
 0x30c   : > { %v1129_v9 = vmul.f32 1.442695, %v1127_v7 }
 0x30d   : > { %v1126_v10 = vpop.xlane.xlu0 %1125 }
 0x30e   : > { %v1128_v11 = vsub.f32 %v1117_v63, %v1126_v10  ;;  %3272 = vpow2.f32 %v1129_v9 }
 0x310   : > { %v1131_v12 = vmul.f32 1.442695, %v1128_v11 }
 0x311   : > { %v1315_v14 = vpop.permute.xlu0 %1314 }
 0x312   : > { %3274 = vpow2.f32 %v1131_v12  ;;  %v1320_v15 = vsel %vm1072_vm1, %v1315_v14, 0 }
 0x313   : > { %3000 = vmatpush3.bf16.xpose.msra.mxu0 %v1320_v15 }
 0x314   : > { %3011 = vmatprep.subr.bf16.mxu0 %v3486_v4 }
 0x318   : > { %v3939_v18 = vpop.eup %3272 }
 0x31a   : > { %3002 = vmatmul.mubr.msk.bf16.vlgmr.msra.gmra.mrb[4].mxu0 %vm1072_vm1, %v1313_v13 }
 0x31b   : > { %3012 = vmatpush3.bf16.xpose.msra.mxu0 %v1441_v17  ;;  %3013 = vmatprep.mubr.msk.bf16.mxu0 %vm3487_vm0, %v3486_v4 }
 0x31c   : > { %v3943_v19 = vpop.eup %3274  ;;  %3023 = vmatprep.subr.bf16.mxu0 %v3486_v4 }
 0x31d   : > { %v1139_v20 = vpack.c.bf16 %v3943_v19, %v3939_v18 }
 0x31f   : > { %2984 = vmatmul.mubr.msk.bf16.vlgmr.msra.gmra.mrb[8].mxu1 %vm1120_vm2, %v1139_v20 }
 0x320   : > { %2988 = vmatpush3.bf16.xpose.msra.mxu1 %v1198_v21  ;;  %2989 = vmatprep.mubr.msk.bf16.mxu1 %vm3487_vm0, %v3486_v4 }
 0x321   : > { %2993 = vmatprep.subr.bf16.mxu1 %v3486_v4 }
 0x322   : > { %3014 = vmatmul.mubr.msk.bf16.vlgmr.msra.gmra.mrb[8].mxu0 %vm1072_vm1, %v1434_v22 }
 0x323   : > { %3039 = vmatprep.mubr.msk.bf16.mxu0 %vm3487_vm0, %v3486_v4 }
 0x327   : > { %2990 = vmatmul.mubr.msk.bf16.vlgmr.msra.gmra.mrb[12].mxu1 %vm1072_vm1, %v1190_v8 }
 0x328   : > { %2995 = vmatprep.mubr.msk.bf16.mxu1 %vm3487_vm0, %v3486_v4 }
 0x3ed   : > { %v1356_v23 = vpop.f32.mrb[4].mxu0 }
 0x3ee   : > { %v1357_v24 = vadd.f32 %v1356_v23, %v3923_v57  ;;  %v3003_v26 = vpop.f32.mrb[5].mxu0 }
 0x3ef   : > { %v1359_v27 = vpop.f32.mrb[6].mxu0 }
 0x3f0   : > { %v1360_v28 = vadd.f32 %v1359_v27, %v3928_v59  ;;  %v3004_v31 = vpop.f32.mrb[7].mxu0  ;;  %v1363_v33 = vsel %vm1120_vm2, %v1357_v24, -inf }
 0x3f1   : > { %1364 = vmax.xlane.f32.xlu1 %v1363_v33  ;;  %v1136_v33 = vsel %vm1120_vm2, %v3943_v19, 0.0  ;;  %v3184_v19 = vld [vmem:[%s3775_s11] sm:$0xff]  }
 0x3f2   : > { %v3962_v34 = vpop.f32.mrb[8].mxu1  ;;  %v1366_v37 = vsel %vm1120_vm2, %v1360_v28, -inf  ;;  %3024 = vmatpush3.bf16.msra.mxu0 %v3184_v19 }
 0x3f3   : > { %v2985_v35 = vpop.f32.mrb[9].mxu1  ;;  %3025 = vmatprep.subr.bf16.mxu0 %v3486_v4 }
 0x3f4   : > { %v3964_v36 = vpop.f32.mrb[10].mxu1  ;;  %v1133_v35 = vsel %vm1120_vm2, %v3939_v18, 0.0  ;;  %v3186_v18 = vld [vmem:[%s3775_s11 + $0x10] sm:$0xff]  }
 0x3f5   : > { %1367 = vmax.xlane.f32.xlu1 %v1366_v37  ;;  %v2986_v38 = vpop.f32.mrb[11].mxu1  ;;  %v1477_v39 = vpop.f32.mrb[8].mxu0 }
 0x3f6   : > { %v1478_v40 = vadd.f32 %v1477_v39, %v3923_v57  ;;  %v3015_v41 = vpop.f32.mrb[9].mxu0 }
 0x3f7   : > { %v1480_v42 = vpop.f32.mrb[10].mxu0 }
 0x3f8   : > { %v1481_v43 = vadd.f32 %v1480_v42, %v3928_v59  ;;  %v3016_v44 = vpop.f32.mrb[11].mxu0  ;;  %v1484_v45 = vsel %vm1120_vm2, %v1478_v40, -inf }
 0x3f9   : > { %1485 = vmax.xlane.f32.xlu0 %v1484_v45  ;;  %v3187_v45 = vld [vmem:[%s3775_s11 + $0x18] sm:$0xff]  }
 0x3fa   : > { %v1234_v46 = vpop.f32.mrb[12].mxu1  ;;  %v1487_v47 = vsel %vm1120_vm2, %v1481_v43, -inf }
 0x3fb   : > { %v1235_v49 = vadd.f32 %v1234_v46, %v3923_v57  ;;  %1488 = vmax.xlane.f32.xlu1 %v1487_v47  ;;  %v2991_v50 = vpop.f32.mrb[13].mxu1  ;;  %v3188_v46 = vld [vmem:[%s3775_s11 + $0x20] sm:$0xff]  }
 0x3fc   : > { %v1237_v51 = vpop.f32.mrb[14].mxu1 }
 0x3fd   : > { %v1238_v52 = vadd.f32 %v1237_v51, %v3928_v59  ;;  %v2992_v53 = vpop.f32.mrb[15].mxu1  ;;  %v1241_v54 = vsel %vm1120_vm2, %v1235_v49, -inf }
 0x3ff   : > { %1242 = vmax.xlane.f32.xlu1 %v1241_v54  ;;  %v1244_v55 = vsel %vm1120_vm2, %v1238_v52, -inf }
 0x400   : > { %1245 = vmax.xlane.f32.xlu0 %v1244_v55 }
 0x410   : > { %1382 = vrot.lane.b32.xlu1 %v3916_v56, %s3489_s3 }
 0x414   : > { %1503 = vrot.lane.b32.xlu1 %v3916_v56, %s3490_s10 }
 0x416   : > { %1261 = vrot.lane.b32.xlu0 %v3916_v56, %s3488_s2 }
 0x47e   : > { %v1365_v57 = vpop.xlane.xlu1 %1364 }
 0x47f   : > { %v1369_v58 = vsub.f32 %v1357_v24, %v1365_v57  ;;  %v3189_v57 = vld [vmem:[%s3775_s11 + $0x28] sm:$0xff]  }
 0x481   : > { %v1371_v60 = vmul.f32 1.442695, %v1369_v58 }
 0x482   : > { %v1368_v59 = vpop.xlane.xlu1 %1367 }
 0x483   : > { %3276 = vpow2.f32 %v1371_v60  ;;  %v1370_v61 = vsub.f32 %v1360_v28, %v1368_v59 }
 0x485   : > { %v1373_v62 = vmul.f32 1.442695, %v1370_v61  ;;  %v3190_v61 = vld [vmem:[%s3775_s11 + $0x30] sm:$0xff]  }
 0x486   : > { %v1486_v0 = vpop.xlane.xlu0 %1485 }
 0x487   : > { %3278 = vpow2.f32 %v1373_v62  ;;  %v1490_v2 = vsub.f32 %v1478_v40, %v1486_v0  ;;  %v3185_v40 = vld [vmem:[%s3775_s11 + $0x8] sm:$0xff]  }
 0x488   : > { %v1489_v63 = vpop.xlane.xlu1 %1488  ;;  %3026 = vmatpush3.bf16.msra.mxu0 %v3185_v40 }
 0x489   : > { %v1491_v1 = vsub.f32 %v1481_v43, %v1489_v63  ;;  %v1492_v12 = vmul.f32 1.442695, %v1490_v2  ;;  %3027 = vmatprep.subr.bf16.mxu0 %v3486_v4 }
 0x48b   : > { %v1494_v56 = vmul.f32 1.442695, %v1491_v1 }
 0x48c   : > { %v1243_v5 = vpop.xlane.xlu1 %1242  ;;  %3028 = vmatpush3.bf16.msra.mxu0 %v3186_v18 }
 0x48d   : > { %v3277_v6 = vpop.eup %3276  ;;  %v1247_v7 = vsub.f32 %v1235_v49, %v1243_v5  ;;  %v1246_v8 = vpop.xlane.xlu0 %1245  ;;  %3029 = vmatprep.subr.bf16.mxu0 %v3486_v4 }
 0x48e   : > { %v1248_v9 = vsub.f32 %v1238_v52, %v1246_v8  ;;  %v1375_v10 = vsel %vm1120_vm2, %v3277_v6, 0.0  ;;  %v3191_v8 = vld [vmem:[%s3775_s11 + $0x38] sm:$0xff]  }
 0x48f   : > { %v1249_v11 = vmul.f32 1.442695, %v1247_v7  ;;  %1376 = vadd.xlane.f32.xlu0 %v1375_v10 }
 0x490   : > { %v1251_v13 = vmul.f32 1.442695, %v1248_v9  ;;  %v1383_v27 = vpop.permute.xlu1 %1382  ;;  %3030 = vmatpush3.bf16.msra.mxu0 %v3187_v45 }
 0x491   : > { %v3279_v14 = vpop.eup %3278  ;;  %3280 = vpow2.f32 %v1249_v11  ;;  %v1262_v15 = vpop.permute.xlu0 %1261  ;;  %3031 = vmatprep.subr.bf16.mxu0 %v3486_v4 }
 0x492   : > { %3282 = vpow2.f32 %v1251_v13  ;;  %2994 = vmatpush3.bf16.msra.mxu1 %v1262_v15  ;;  %v1378_v16 = vsel %vm1120_vm2, %v3279_v14, 0.0  ;;  %v1381_v37 = vpack.c.bf16 %v3279_v14, %v3277_v6 }
 0x493   : > { %3284 = vpow2.f32 %v1494_v56  ;;  %1379 = vadd.xlane.f32.xlu0 %v1378_v16  ;;  %3005 = vmatprep.subr.bf16.mxu1 %v3486_v4 }
 0x494   : > { %3286 = vpow2.f32 %v1492_v12  ;;  %v1504_v38 = vpop.permute.xlu1 %1503  ;;  %3032 = vmatpush3.bf16.msra.mxu0 %v3188_v46 }
 0x495   : > { %3033 = vmatprep.subr.bf16.mxu0 %v3486_v4 }
 0x498   : > { %3034 = vmatpush3.bf16.msra.mxu0 %v3189_v57  ;;  %v3195_v57 = vld [vmem:[%s3784_s0 + $0x8] ss:$16 sps:$4 sm:$0xff]  }
 0x499   : > { %3035 = vmatprep.subr.bf16.mxu0 %v3486_v4 }
 0x49b   : > { %v3281_v17 = vpop.eup %3280 }
 0x49c   : > { %v3283_v20 = vpop.eup %3282  ;;  %v1253_v21 = vsel %vm1120_vm2, %v3281_v17, 0.0  ;;  %3036 = vmatpush3.bf16.msra.mxu0 %v3190_v61  ;;  %v3198_v61 = vld [vmem:[%s3784_s0 + $0x20] ss:$16 sps:$4 sm:$0xff]  }
 0x49d   : > { %v3285_v22 = vpop.eup %3284  ;;  %1254 = vadd.xlane.f32.xlu0 %v1253_v21  ;;  %v1256_v23 = vsel %vm1120_vm2, %v3283_v20, 0.0  ;;  %v1259_v24 = vpack.c.bf16 %v3283_v20, %v3281_v17  ;;  %3037 = vmatprep.subr.bf16.mxu0 %v3486_v4 }
 0x49e   : > { %v3287_v26 = vpop.eup %3286  ;;  %1257 = vadd.xlane.f32.xlu1 %v1256_v23  ;;  %v1499_v28 = vsel %vm1120_vm2, %v3285_v22, 0.0 }
 0x49f   : > { %2996 = vmatmul.mubr.msk.bf16.vlgmr.msra.gmra.mrb[16].mxu1 %vm1120_vm2, %v1259_v24  ;;  %v1496_v31 = vsel %vm1120_vm2, %v3287_v26, 0.0  ;;  %v1502_v39 = vpack.c.bf16 %v3285_v22, %v3287_v26 }
 0x4a0   : > { %3006 = vmatpush3.bf16.msra.mxu1 %v1383_v27  ;;  %3007 = vmatprep.mubr.msk.bf16.mxu1 %vm3487_vm0, %v3486_v4 }
 0x4a1   : > { %1500 = vadd.xlane.f32.xlu0 %v1499_v28  ;;  %3017 = vmatprep.subr.bf16.mxu1 %v3486_v4 }
 0x4a2   : > { %1497 = vadd.xlane.f32.xlu1 %v1496_v31  ;;  %3038 = vmatpush3.bf16.msra.mxu0 %v3191_v8  ;;  %v3206_v8 = vld [vmem:[%s3784_s0 + $0x44] ss:$16 sps:$4 sm:$0xff]  }
 0x4a5   : > { %1137 = vadd.xlane.f32.xlu0 %v1136_v33 }
 0x4a6   : > { %1134 = vadd.xlane.f32.xlu1 %v1133_v35 }
 0x4a7   : > { %3008 = vmatmul.mubr.msk.bf16.vlgmr.msra.gmra.mrb[20].mxu1 %vm1120_vm2, %v1381_v37 }
 0x4a8   : > { %3018 = vmatpush3.bf16.msra.mxu1 %v1504_v38  ;;  %3019 = vmatprep.mubr.msk.bf16.mxu1 %vm3487_vm0, %v3486_v4 }
 0x4af   : > { %3020 = vmatmul.mubr.msk.bf16.vlgmr.msra.gmra.mrb[24].mxu1 %vm1120_vm2, %v1502_v39 }
 0x4b0   : > { %1991 = vmatprep.mubr.bf16.mxu1 %v3485_v3 }
 0x51c   : > { %v1377_v41 = vpop.xlane.xlu0 %1376 }
 0x520   : > { %v1380_v42 = vpop.xlane.xlu0 %1379 }
 0x52a   : > { %v1255_v43 = vpop.xlane.xlu0 %1254 }
 0x52b   : > { %v1258_v44 = vpop.xlane.xlu1 %1257  ;;  %3288 = vrcp.f32 %v1255_v43 }
 0x52c   : > { %3290 = vrcp.f32 %v1258_v44 }
 0x52d   : > { %3292 = vrcp.f32 %v1377_v41 }
 0x52e   : > { %3294 = vrcp.f32 %v1380_v42  ;;  %v1501_v58 = vpop.xlane.xlu0 %1500 }
 0x52f   : > { %v1498_v60 = vpop.xlane.xlu1 %1497  ;;  %3296 = vrcp.f32 %v1501_v58  ;;  %v3197_v58 = vld [vmem:[%s3784_s0 + $0xc] ss:$16 sps:$4 sm:$0xff]  }
 0x530   : > { %3298 = vrcp.f32 %v1498_v60  ;;  %v3200_v60 = vld [vmem:[%s3784_s0 + $0x24] ss:$16 sps:$4 sm:$0xff]   ;;  %2002 = vmatprep.subr.bf16.mxu0 %v3197_v58  ;;  %v3246_v58 = vld [vmem:[%s3846_s30 + $0x8] sm:$0xff]  }
 0x532   : > { %v1138_v4 = vpop.xlane.xlu0 %1137 }
 0x533   : > { %v1135_v20 = vpop.xlane.xlu1 %1134  ;;  %3300 = vrcp.f32 %v1138_v4  ;;  %v3219_v4 = vld [vmem:[%s3784_s0 + $0x88] ss:$16 sps:$4 sm:$0xff]  }
 0x534   : > { %3302 = vrcp.f32 %v1135_v20  ;;  %v3224_v20 = vld [vmem:[%s3784_s0 + $0xa4] ss:$16 sps:$4 sm:$0xff]  }
 0x535   : > { %v3289_v49 = vpop.eup %3288 }
 0x536   : > { %v3291_v51 = vpop.eup %3290 }
 0x537   : > { %v3293_v63 = vpop.eup %3292 }
 0x538   : > { %v3295_v1 = vpop.eup %3294 }
 0x539   : > { %v3297_v56 = vpop.eup %3296 }
 0x53a   : > { %v3299_v12 = vpop.eup %3298 }
 0x53d   : > { %v3301_v22 = vpop.eup %3300 }
 0x53e   : > { %v3303_v24 = vpop.eup %3302  ;;  %v1187_v35 = vmul.f32 %v3301_v22, %v3964_v36  ;;  %v1699_v36 = vunpack.c.l.bf16 %v3877_v25  ;;  %v3222_v22 = vld [vmem:[%s3784_s0 + $0xa0] ss:$16 sps:$4 sm:$0xff]  }
 0x53f   : > { %v1186_v33 = vmul.f32 %v3303_v24, %v3962_v34  ;;  %v2780_v34 = vld [vmem:[%s4254_s21] ss:$0 sm:$0xff]  ;;  %v3230_v24 = vld [vmem:[%s3784_s0 + $0xc4] ss:$16 sps:$4 sm:$0xff]  }
 0x572   : > { %v1301_v47 = vpop.f32.mrb[16].mxu1 }
 0x573   : > { %v2997_v50 = vpop.f32.mrb[17].mxu1  ;;  %v1310_v53 = vmul.f32 %v3289_v49, %v1301_v47  ;;  %v1700_v49 = vunpack.c.h.bf16 %v3877_v25  ;;  %v3201_v25 = vld [vmem:[%s3784_s0 + $0x28] ss:$16 sps:$4 sm:$0xff]  }
 0x574   : > { %v1304_v52 = vpop.f32.mrb[18].mxu1 }
 0x575   : > { %v1311_v54 = vmul.f32 %v3291_v51, %v1304_v52  ;;  %v2998_v55 = vpop.f32.mrb[19].mxu1 }
 0x576   : > { %v3194_v55 = vld [vmem:[%s3784_s0 + $0x4] ss:$16 sps:$4 sm:$0xff]  }
 0x577   : > { %v3137_v59 = vpack.i.bf16 %v1311_v54, %v1310_v53  ;;  %v3192_v54 = vld [vmem:[%s3784_s0] ss:$16 sps:$4 sm:$0xff]   ;;  %1959 = vmatprep.subr.bf16.mxu1 %v3194_v55  ;;  %v3244_v55 = vld [vmem:[%s3846_s30 + $0x48] sm:$0xff]  }
 0x578   : > { %1960 = vmatpush1.bf16.msra.mxu1 %v3192_v54 }
 0x579   : > { %3138 = vrot.lane.b32.xlu1 %v3137_v59, %s3490_s10  ;;  %v3203_v59 = vld [vmem:[%s3784_s0 + $0x2c] ss:$16 sps:$4 sm:$0xff]   ;;  %1961 = vmatprep.subr.bf16.mxu1 %v3200_v60 }
 0x57a   : > { %v1422_v62 = vpop.f32.mrb[20].mxu1  ;;  %v3247_v60 = vld [vmem:[%s3846_s30 + $0x88] sm:$0xff]  }
 0x57b   : > { %v3009_v0 = vpop.f32.mrb[21].mxu1  ;;  %v1431_v5 = vmul.f32 %v3293_v63, %v1422_v62 }
 0x57c   : > { %v1425_v2 = vpop.f32.mrb[22].mxu1  ;;  %1962 = vmatpush1.bf16.msra.mxu1 %v3198_v61  ;;  %v3249_v61 = vld [vmem:[%s3846_s30 + $0xd0] sm:$0xff]  }
 0x57d   : > { %v1432_v6 = vmul.f32 %v3295_v1, %v1425_v2  ;;  %v3010_v7 = vpop.f32.mrb[23].mxu1  ;;  %1963 = vmatprep.subr.bf16.mxu1 %v3206_v8  ;;  %v3259_v8 = vld [vmem:[%s3846_s30 + $0xa0] sm:$0xff]  }
 0x57f   : > { %v3142_v9 = vpack.i.bf16 %v1432_v6, %v1431_v5 }
 0x581   : > { %3143 = vrot.lane.b32.xlu0 %v3142_v9, %s3489_s3  ;;  %v3209_v9 = vld [vmem:[%s3784_s0 + $0x4c] ss:$16 sps:$4 sm:$0xff]  }
 0x582   : > { %v1543_v10 = vpop.f32.mrb[24].mxu1 }
 0x583   : > { %v3021_v11 = vpop.f32.mrb[25].mxu1  ;;  %v1552_v14 = vmul.f32 %v3299_v12, %v1543_v10  ;;  %v3204_v10 = vld [vmem:[%s3784_s0 + $0x40] ss:$16 sps:$4 sm:$0xff]   ;;  %v3215_v12 = vld [vmem:[%s3784_s0 + $0x6c] ss:$16 sps:$4 sm:$0xff]  }
 0x584   : > { %v1546_v13 = vpop.f32.mrb[26].mxu1  ;;  %1964 = vmatpush1.bf16.msra.mxu1 %v3204_v10  ;;  %v3212_v11 = vld [vmem:[%s3784_s0 + $0x64] ss:$16 sps:$4 sm:$0xff]   ;;  %v3261_v10 = vld [vmem:[%s3846_s30 + $0xe8] sm:$0xff]  }
 0x585   : > { %v1553_v15 = vmul.f32 %v3297_v56, %v1546_v13  ;;  %v3022_v16 = vpop.f32.mrb[27].mxu1  ;;  %v3207_v56 = vld [vmem:[%s3784_s0 + $0x48] ss:$16 sps:$4 sm:$0xff]   ;;  %v3210_v13 = vld [vmem:[%s3784_s0 + $0x60] ss:$16 sps:$4 sm:$0xff]   ;;  %1965 = vmatprep.subr.bf16.mxu1 %v3212_v11 }
 0x586   : > { %v3221_v16 = vld [vmem:[%s3784_s0 + $0x8c] ss:$16 sps:$4 sm:$0xff]  }
 0x587   : > { %v3147_v17 = vpack.i.bf16 %v1553_v15, %v1552_v14  ;;  %v3213_v14 = vld [vmem:[%s3784_s0 + $0x68] ss:$16 sps:$4 sm:$0xff]   ;;  %v3218_v15 = vld [vmem:[%s3784_s0 + $0x84] ss:$16 sps:$4 sm:$0xff]  }
 0x588   : > { %1966 = vmatpush1.bf16.msra.mxu1 %v3210_v13  ;;  %v3263_v11 = vld [vmem:[%s3846_s30 + $0xa8] sm:$0xff]   ;;  %v3265_v13 = vld [vmem:[%s3846_s30 + $0xf0] sm:$0xff]  }
 0x589   : > { %3148 = vrot.lane.b32.xlu1 %v3147_v17, %s3488_s2  ;;  %v3216_v17 = vld [vmem:[%s3784_s0 + $0x80] ss:$16 sps:$4 sm:$0xff]   ;;  %1967 = vmatprep.subr.bf16.mxu1 %v3218_v15 }
 0x58a   : > { %v3267_v15 = vld [vmem:[%s3846_s30 + $0xb0] sm:$0xff]  }
 0x58c   : > { %1968 = vmatpush1.bf16.msra.mxu1 %v3216_v17  ;;  %v3269_v17 = vld [vmem:[%s3846_s30 + $0xf8] sm:$0xff]  }
 0x58d   : > { %1969 = vmatprep.subr.bf16.mxu1 %v3224_v20  ;;  %v3271_v20 = vld [vmem:[%s3846_s30 + $0xb8] sm:$0xff]  }
 0x590   : > { %1970 = vmatpush1.bf16.msra.mxu1 %v3222_v22  ;;  %v1793_v22 = vsub.s32 3, %v3894_v29 }
 0x591   : > { %1971 = vmatprep.subr.bf16.mxu1 %v3230_v24 }
 0x5eb   : > { %v3139_v21 = vpop.permute.xlu1 %3138 }
 0x5ec   : > { %v3141_v26 = vunpack.i.h.bf16 %v3139_v21  ;;  %v3140_v27 = vunpack.i.l.bf16 %v3139_v21  ;;  %v3227_v21 = vld [vmem:[%s3784_s0 + $0xac] ss:$16 sps:$4 sm:$0xff]  }
 0x5ee   : > { %v1579_v38 = vsel %vm1072_vm1, %v1187_v35, %v3141_v26  ;;  %v1578_v39 = vsel %vm1072_vm1, %v1186_v33, %v3140_v27  ;;  %v3233_v26 = vld [vmem:[%s3784_s0 + $0xcc] ss:$16 sps:$4 sm:$0xff]   ;;  %v3228_v27 = vld [vmem:[%s3784_s0 + $0xc0] ss:$16 sps:$4 sm:$0xff]  }
 0x5ef   : > { %v3239_v33 = vld [vmem:[%s3784_s0 + $0xec] ss:$16 sps:$4 sm:$0xff]   ;;  %1972 = vmatpush1.bf16.msra.mxu1 %v3228_v27  ;;  %v3234_v35 = vld [vmem:[%s3784_s0 + $0xe0] ss:$16 sps:$4 sm:$0xff]  }
 0x5f3   : > { %v3144_v23 = vpop.permute.xlu0 %3143 }
 0x5f4   : > { %v3146_v28 = vunpack.i.h.bf16 %v3144_v23  ;;  %v3145_v31 = vunpack.i.l.bf16 %v3144_v23  ;;  %v3225_v23 = vld [vmem:[%s3784_s0 + $0xa8] ss:$16 sps:$4 sm:$0xff]  }
 0x5f6   : > { %v1582_v18 = vsel %vm1580_vm3, %v1579_v38, %v3146_v28  ;;  %v1581_v41 = vsel %vm1580_vm3, %v1578_v39, %v3145_v31  ;;  %v3231_v28 = vld [vmem:[%s3784_s0 + $0xc8] ss:$16 sps:$4 sm:$0xff]   ;;  %v3236_v31 = vld [vmem:[%s3784_s0 + $0xe4] ss:$16 sps:$4 sm:$0xff]  }
 0x5f7   : > { %1973 = vmatprep.subr.bf16.mxu1 %v3236_v31  ;;  %v3240_v38 = vld [vmem:[%s3846_s30 + $0x40] sm:$0xff]  }
 0x5f8   : > { %1974 = vmatpush1.bf16.msra.mxu1 %v3234_v35  ;;  %v3241_v39 = vld [vmem:[%s3846_s30 + $0xc0] sm:$0xff]  }
 0x5f9   : > { %2911 = vmatprep.subr.bf16.mxu1 %v3240_v38 }
 0x5fb   : > { %v3149_v37 = vpop.permute.xlu1 %3148 }
 0x5fc   : > { %v3151_v19 = vunpack.i.h.bf16 %v3149_v37  ;;  %v3150_v40 = vunpack.i.l.bf16 %v3149_v37  ;;  %v3237_v37 = vld [vmem:[%s3784_s0 + $0xe8] ss:$16 sps:$4 sm:$0xff]  }
 0x5fe   : > { %v1585_v42 = vsel %vm1583_vm4, %v1582_v18, %v3151_v19  ;;  %v1584_v43 = vsel %vm1583_vm4, %v1581_v41, %v3150_v40 }
 0x5ff   : > { %v1586_v44 = vpack.c.bf16 %v1585_v42, %v1584_v43 }
 0x601   : > { %3040 = vmatmul.mubr.bf16.vlgmr.msra.gmra.mrb[12].mxu0 %v1586_v44 }
 0x602   : > { %2034 = vmatprep.mubr.bf16.mxu0 %v3485_v3  ;;  %2003 = vmatpush1.bf16.msra.mxu0 %v3195_v57  ;;  %v3245_v57 = vld [vmem:[%s3846_s30 + $0xc8] sm:$0xff]  }
 0x603   : > { %2004 = vmatprep.subr.bf16.mxu0 %v3203_v59  ;;  %v3248_v59 = vld [vmem:[%s3846_s30 + $0x50] sm:$0xff]  }
 0x606   : > { %2005 = vmatpush1.bf16.msra.mxu0 %v3201_v25  ;;  %v3250_v25 = vld [vmem:[%s3846_s30 + $0x10] sm:$0xff]  }
 0x607   : > { %2006 = vmatprep.subr.bf16.mxu0 %v3209_v9  ;;  %v3260_v9 = vld [vmem:[%s3846_s30 + $0x68] sm:$0xff]  }
 0x60a   : > { %2007 = vmatpush1.bf16.msra.mxu0 %v3207_v56  ;;  %v3262_v56 = vld [vmem:[%s3846_s30 + $0x28] sm:$0xff]  }
 0x60b   : > { %2008 = vmatprep.subr.bf16.mxu0 %v3215_v12  ;;  %v3264_v12 = vld [vmem:[%s3846_s30 + $0x70] sm:$0xff]  }
 0x60e   : > { %2009 = vmatpush1.bf16.msra.mxu0 %v3213_v14  ;;  %v3266_v14 = vld [vmem:[%s3846_s30 + $0x30] sm:$0xff]  }
 0x60f   : > { %2010 = vmatprep.subr.bf16.mxu0 %v3221_v16  ;;  %v3268_v16 = vld [vmem:[%s3846_s30 + $0x78] sm:$0xff]  }
 0x612   : > { %2011 = vmatpush1.bf16.msra.mxu0 %v3219_v4  ;;  %v3270_v4 = vld [vmem:[%s3846_s30 + $0x38] sm:$0xff]  }
 0x613   : > { %2012 = vmatprep.subr.bf16.mxu0 %v3227_v21  ;;  %v1777_v21 = vld [vmem:[%s3831_s28] sm:$0xf] }
 0x614   : > { %v1790_v24 = vrot.slane %v1777_v21, %v848_v48  ;;  %v1794_v27 = vrot.slane %v1777_v21, %v1793_v22 }
 0x616   : > { %2013 = vmatpush1.bf16.msra.mxu0 %v3225_v23  ;;  %v1782_v23 = vrot.slane %v1777_v21, %v840_v30 }
 0x617   : > { %2014 = vmatprep.subr.bf16.mxu0 %v3233_v26  ;;  %v1786_v26 = vrot.slane %v1777_v21, %v844_v32 }
 0x61a   : > { %2015 = vmatpush1.bf16.msra.mxu0 %v3231_v28 }
 0x61b   : > { %2016 = vmatprep.subr.bf16.mxu0 %v3239_v33 }
 0x61e   : > { %2017 = vmatpush1.bf16.msra.mxu0 %v3237_v37 }
 0x61f   : > { %2933 = vmatprep.subr.bf16.mxu0 %v3241_v39 }
 0x6d4   : > { %v1692_v45 = vpop.f32.mrb[12].mxu0 }
 0x6d5   : > { %v1693_v46 = vadd.f32 %v2780_v34, %v1692_v45  ;;  %v3041_v47 = vpop.f32.mrb[13].mxu0 }
 0x6d6   : > { %v1695_v50 = vpop.f32.mrb[14].mxu0 }
 0x6d7   : > { %v1696_v51 = vadd.f32 %v2780_v34, %v1695_v50  ;;  %v3042_v3 = vpop.f32.mrb[15].mxu0  ;;  %v1701_v52 = vadd.f32 %v1699_v36, %v1693_v46  ;;  %v2789_v34 = vld [vmem:[%s4256_s15] ss:$0 sm:$0xff] }
 0x6d9   : > { %1705 = vadd.xlane.f32.xlu1 %v1701_v52  ;;  %v1702_v53 = vadd.f32 %v1700_v49, %v1696_v51  ;;  %v2790_v49 = vld [vmem:[%s4258_s25] ss:$0 sm:$0xff] }
 0x6db   : > { %1707 = vadd.xlane.f32.xlu0 %v1702_v53 }
 0x766   : > { %v1706_v62 = vpop.xlane.xlu1 %1705 }
 0x767   : > { %v1710_v63 = vmul.f32 0.0078125, %v1706_v62  ;;  %v3251_v62 = vld [vmem:[%s3846_s30 + $0x90] sm:$0xff]  }
 0x768   : > { %v1708_v0 = vpop.xlane.xlu0 %1707 }
 0x769   : > { %v4039_v1 = vsub.f32 %v1701_v52, %v1710_v63  ;;  %v1711_v2 = vmul.f32 0.0078125, %v1708_v0  ;;  %v3242_v52 = vld [vmem:[%s3846_s30] sm:$0xff]   ;;  %v3252_v63 = vld [vmem:[%s3846_s30 + $0x58] sm:$0xff]  }
 0x76a   : > { %v3253_v0 = vld [vmem:[%s3846_s30 + $0xd8] sm:$0xff]  }
 0x76b   : > { %v4041_v5 = vsub.f32 %v1702_v53, %v1711_v2  ;;  %v1714_v6 = vmul.f32 %v4039_v1, %v4039_v1  ;;  %v3243_v53 = vld [vmem:[%s3846_s30 + $0x80] sm:$0xff]   ;;  %v3255_v2 = vld [vmem:[%s3846_s30 + $0x98] sm:$0xff]  }
 0x76d   : > { %1716 = vadd.xlane.f32.xlu0 %v1714_v6  ;;  %v1715_v7 = vmul.f32 %v4041_v5, %v4041_v5  ;;  %v3257_v6 = vld [vmem:[%s3846_s30 + $0xe0] sm:$0xff]  }
 0x76f   : > { %1718 = vadd.xlane.f32.xlu1 %v1715_v7  ;;  %v3258_v7 = vld [vmem:[%s3846_s30 + $0x20] sm:$0xff]  }
 0x7fa   : > { %v1717_v19 = vpop.xlane.xlu0 %1716 }
 0x7fb   : > { %v1720_v40 = vmul.f32 0.0078125, %v1717_v19 }
 0x7fc   : > { %v1719_v18 = vpop.xlane.xlu1 %1718 }
 0x7fd   : > { %v1722_v41 = vadd.f32 1e-05, %v1720_v40  ;;  %v1721_v42 = vmul.f32 0.0078125, %v1719_v18 }
 0x7ff   : > { %3304 = vrsqrt.f32 %v1722_v41  ;;  %v1723_v43 = vadd.f32 1e-05, %v1721_v42 }
 0x801   : > { %3306 = vrsqrt.f32 %v1723_v43 }
 0x809   : > { %v3305_v44 = vpop.eup %3304 }
 0x80a   : > { %v1726_v36 = vmul.f32 %v3305_v44, %v4039_v1  ;;  %v3254_v1 = vld [vmem:[%s3846_s30 + $0x18] sm:$0xff]  }
 0x80b   : > { %v3307_v45 = vpop.eup %3306 }
 0x80c   : > { %v1727_v46 = vmul.f32 %v3307_v45, %v4041_v5  ;;  %v1734_v47 = vmul.f32 %v2789_v34, %v1726_v36  ;;  %v3256_v5 = vld [vmem:[%s3846_s30 + $0x60] sm:$0xff]  }
 0x80e   : > { %v1735_v50 = vmul.f32 %v2789_v34, %v1727_v46  ;;  %v4085_v51 = vadd.f32 %v2790_v49, %v1734_v47 }
 0x810   : > { %v4087_v3 = vadd.f32 %v2790_v49, %v1735_v50 }
 0x812   : > { %v1744_v54 = vpack.c.bf16 %v4087_v3, %v4085_v51 }
 0x814   : > { %1992 = vmatmul.mubr.bf16.vlgmr.msra.gmra.mrb[28].mxu1 %v1744_v54  ;;  %2035 = vmatmul.mubr.bf16.vlgmr.msra.gmra.mrb[16].mxu0 %v1744_v54 }
 0x815   : > { %2912 = vmatpush3.bf16.msra.mxu1 %v3242_v52  ;;  %2934 = vmatpush3.bf16.msra.mxu0 %v3243_v53 }
 0x816   : > { %2913 = vmatprep.subr.bf16.mxu1 %v3244_v55  ;;  %2935 = vmatprep.subr.bf16.mxu0 %v3245_v57 }
 0x819   : > { %2914 = vmatpush3.bf16.msra.mxu1 %v3246_v58  ;;  %2936 = vmatpush3.bf16.msra.mxu0 %v3247_v60  ;;  %v2823_v58 = vld [vmem:[%s777_s13] ss:$0 sm:$0xff] }
 0x81a   : > { %2915 = vmatprep.subr.bf16.mxu1 %v3248_v59  ;;  %2937 = vmatprep.subr.bf16.mxu0 %v3249_v61 }
 0x81d   : > { %2916 = vmatpush3.bf16.msra.mxu1 %v3250_v25  ;;  %2938 = vmatpush3.bf16.msra.mxu0 %v3251_v62 }
 0x81e   : > { %2917 = vmatprep.subr.bf16.mxu1 %v3252_v63  ;;  %2939 = vmatprep.subr.bf16.mxu0 %v3253_v0 }
 0x821   : > { %2918 = vmatpush3.bf16.msra.mxu1 %v3254_v1  ;;  %2940 = vmatpush3.bf16.msra.mxu0 %v3255_v2 }
 0x822   : > { %2919 = vmatprep.subr.bf16.mxu1 %v3256_v5  ;;  %2941 = vmatprep.subr.bf16.mxu0 %v3257_v6 }
 0x825   : > { %2920 = vmatpush3.bf16.msra.mxu1 %v3258_v7  ;;  %2942 = vmatpush3.bf16.msra.mxu0 %v3259_v8 }
 0x826   : > { %2921 = vmatprep.subr.bf16.mxu1 %v3260_v9  ;;  %2943 = vmatprep.subr.bf16.mxu0 %v3261_v10 }
 0x829   : > { %2922 = vmatpush3.bf16.msra.mxu1 %v3262_v56  ;;  %2944 = vmatpush3.bf16.msra.mxu0 %v3263_v11 }
 0x82a   : > { %2923 = vmatprep.subr.bf16.mxu1 %v3264_v12  ;;  %2945 = vmatprep.subr.bf16.mxu0 %v3265_v13 }
 0x82d   : > { %2924 = vmatpush3.bf16.msra.mxu1 %v3266_v14  ;;  %2946 = vmatpush3.bf16.msra.mxu0 %v3267_v15 }
 0x82e   : > { %2925 = vmatprep.subr.bf16.mxu1 %v3268_v16  ;;  %2947 = vmatprep.subr.bf16.mxu0 %v3269_v17 }
 0x831   : > { %2926 = vmatpush3.bf16.msra.mxu1 %v3270_v4  ;;  %2948 = vmatpush3.bf16.msra.mxu0 %v3271_v20 }
 0x8e7   : > { %v1993_v28 = vpop.f32.mrb[28].mxu1  ;;  %v2036_v31 = vpop.f32.mrb[16].mxu0 }
 0x8e8   : > { %v1994_v33 = vadd.f32 %v1993_v28, %v1782_v23  ;;  %v2037_v35 = vadd.f32 %v2036_v31, %v1790_v24  ;;  %v1995_v37 = vpop.f32.mrb[29].mxu1  ;;  %v2038_v38 = vpop.f32.mrb[17].mxu0 }
 0x8e9   : > { %v1996_v39 = vadd.f32 %v1995_v37, %v1786_v26  ;;  %v2039_v19 = vadd.f32 %v2038_v38, %v1794_v27  ;;  %v1997_v40 = vpop.f32.mrb[30].mxu1  ;;  %v2040_v18 = vpop.f32.mrb[18].mxu0 }
 0x8ea   : > { %v1998_v41 = vadd.f32 %v1997_v40, %v1782_v23  ;;  %v2041_v42 = vadd.f32 %v2040_v18, %v1790_v24  ;;  %v1999_v30 = vpop.f32.mrb[31].mxu1  ;;  %v2042_v43 = vpop.f32.mrb[19].mxu0  ;;  %v2045_v34 = vmax.f32 %v1994_v33, 0.0  ;;  %v2047_v29 = vmax.f32 %v2037_v35, 0.0  ;;  %v2857_v35 = vld [vmem:[%s783_s6] ss:$0 sm:$0xff] }
 0x8eb   : > { %v2000_v44 = vadd.f32 %v1999_v30, %v1786_v26  ;;  %v2043_v48 = vadd.f32 %v2042_v43, %v1794_v27  ;;  %v2046_v45 = vmax.f32 %v1996_v39, 0.0  ;;  %v2048_v46 = vmax.f32 %v2039_v19, 0.0  ;;  %v2856_v26 = vld [vmem:[%s780_s4] ss:$0 sm:$0xff] }
 0x8ec   : > { %v2049_v32 = vmax.f32 %v1998_v41, 0.0  ;;  %v2051_v36 = vmax.f32 %v2041_v42, 0.0 }
 0x8ed   : > { %v2050_v47 = vmax.f32 %v2000_v44, 0.0  ;;  %v2052_v49 = vmax.f32 %v2043_v48, 0.0 }
 0x8ee   : > { %v2053_v50 = vpack.c.bf16 %v2049_v32, %v2045_v34  ;;  %v2055_v52 = vpack.c.bf16 %v2051_v36, %v2047_v29 }
 0x8ef   : > { %v2054_v53 = vpack.c.bf16 %v2050_v47, %v2046_v45  ;;  %v2056_v54 = vpack.c.bf16 %v2052_v49, %v2048_v46 }
 0x8f1   : > { %2352 = vmatprep.mubr.bf16.mxu1 %v2054_v53  ;;  %2393 = vmatprep.mubr.bf16.mxu0 %v2056_v54 }
 0x8f2   : > { %2353 = vmatmul.mubr.bf16.vlgmr.msra.gmra.mrb[32].mxu1 %v2053_v50  ;;  %2394 = vmatmul.mubr.bf16.vlgmr.msra.gmra.mrb[20].mxu0 %v2055_v52  ;;  %v2859_v50 = vld [vmem:[%s4262_s29] ss:$0 sm:$0xff] (!%p2858_p0) }
 0x9c5   : > { %v2927_v55 = vpop.f32.mrb[32].mxu1  ;;  %v2949_v57 = vpop.f32.mrb[20].mxu0 }
 0x9c6   : > { %v2928_v60 = vpop.f32.mrb[33].mxu1  ;;  %v2950_v59 = vpop.f32.mrb[21].mxu0 }
 0x9c7   : > { %v2929_v61 = vadd.f32 %v2928_v60, %v2927_v55  ;;  %v2951_v25 = vadd.f32 %v2950_v59, %v2949_v57  ;;  %v2930_v62 = vpop.f32.mrb[34].mxu1  ;;  %v2952_v63 = vpop.f32.mrb[22].mxu0  ;;  %v2860_v55 = vld [vmem:[%s4263_s27] ss:$0 sm:$0xff] (!%p2858_p0) }
 0x9c8   : > { %v2931_v0 = vpop.f32.mrb[35].mxu1  ;;  %v2953_v1 = vpop.f32.mrb[23].mxu0 }
 0x9c9   : > { %v2355_v2 = vadd.f32 %v2929_v61, %v2823_v58  ;;  %v2932_v5 = vadd.f32 %v2931_v0, %v2930_v62  ;;  %v2954_v6 = vadd.f32 %v2953_v1, %v2952_v63 }
 0x9cb   : > { %v2396_v7 = vadd.f32 %v2951_v25, %v2355_v2  ;;  %v2358_v8 = vadd.f32 %v2932_v5, %v2823_v58 }
 0x9cd   : > { %v2399_v9 = vadd.f32 %v2954_v6, %v2358_v8  ;;  %v2402_v10 = vadd.f32 %v2396_v7, %v4085_v51 }
 0x9cf   : > { %2406 = vadd.xlane.f32.xlu0 %v2402_v10  ;;  %v2403_v56 = vadd.f32 %v2399_v9, %v4087_v3 }
 0x9d1   : > { %2408 = vadd.xlane.f32.xlu1 %v2403_v56 }
 0xa5c   : > { %v2407_v11 = vpop.xlane.xlu0 %2406 }
 0xa5d   : > { %v2410_v12 = vmul.f32 0.0078125, %v2407_v11 }
 0xa5e   : > { %v2409_v13 = vpop.xlane.xlu1 %2408 }
 0xa5f   : > { %v2412_v14 = vsub.f32 %v2402_v10, %v2410_v12  ;;  %v2411_v15 = vmul.f32 0.0078125, %v2409_v13 }
 0xa61   : > { %v2413_v16 = vsub.f32 %v2403_v56, %v2411_v15  ;;  %v2414_v17 = vmul.f32 %v2412_v14, %v2412_v14 }
 0xa63   : > { %2416 = vadd.xlane.f32.xlu0 %v2414_v17  ;;  %v2415_v4 = vmul.f32 %v2413_v16, %v2413_v16 }
 0xa65   : > { %2418 = vadd.xlane.f32.xlu1 %v2415_v4 }
 0xaf0   : > { %v2417_v20 = vpop.xlane.xlu0 %2416 }
 0xaf1   : > { %v2420_v21 = vmul.f32 0.0078125, %v2417_v20 }
 0xaf2   : > { %v2419_v22 = vpop.xlane.xlu1 %2418 }
 0xaf3   : > { %v2422_v51 = vadd.f32 1e-05, %v2420_v21  ;;  %v2421_v23 = vmul.f32 0.0078125, %v2419_v22 }
 0xaf5   : > { %3308 = vrsqrt.f32 %v2422_v51  ;;  %v2423_v3 = vadd.f32 1e-05, %v2421_v23 }
 0xaf7   : > { %3310 = vrsqrt.f32 %v2423_v3 }
 0xaff   : > { %v3309_v24 = vpop.eup %3308 }
 0xb00   : > { %v2426_v27 = vmul.f32 %v3309_v24, %v2412_v14 }
 0xb01   : > { %v3311_v28 = vpop.eup %3310 }
 0xb02   : > { %v2434_v31 = vmul.f32 %v2856_v26, %v2426_v27  ;;  %v2427_v33 = vmul.f32 %v3311_v28, %v2413_v16 }
 0xb04   : > { %v2435_v37 = vmul.f32 %v2856_v26, %v2427_v33  ;;  %v2442_v38 = vadd.f32 %v2857_v35, %v2434_v31  ;;  %2449 = sbr.rel (%p2858_p0) target bundleno = 3140 (0xc44), region = 104 }
 0xb06   : > { %v2443_v39 = vadd.f32 %v2857_v35, %v2435_v37  ;;  %2452 = vadd.xlane.f32.xlu0 (!%p2858_p0), %v2442_v38 }
 0xb08   : > { %v2444_v19 = vpack.c.bf16 %v2443_v39, %v2442_v38 }
 0xb0a   : > { %2445 = vst [vmem:[#allocation2] sm:$0xff] %v2444_v19  ;;  %2454 = vadd.xlane.f32.xlu0 (!%p2858_p0), %v2443_v39 }
 0xb93   : > { %v2453_v40 = vpop.xlane.xlu0 %2452 }
 0xb94   : > { %v2456_v18 = vmul.f32 0.0078125, %v2453_v40 }
 0xb96   : > { %v2458_v41 = vsub.f32 %v2442_v38, %v2456_v18 }
 0xb97   : > { %v2455_v42 = vpop.xlane.xlu0 %2454 }
 0xb98   : > { %v2457_v30 = vmul.f32 0.0078125, %v2455_v42  ;;  %v2460_v43 = vmul.f32 %v2458_v41, %v2458_v41 }
 0xb9a   : > { %v2459_v44 = vsub.f32 %v2443_v39, %v2457_v30  ;;  %2462 = vadd.xlane.f32.xlu1 %v2460_v43 }
 0xb9c   : > { %v2461_v48 = vmul.f32 %v2459_v44, %v2459_v44 }
 0xb9e   : > { %2464 = vadd.xlane.f32.xlu1 %v2461_v48 }
 0xc27   : > { %v2463_v34 = vpop.xlane.xlu1 %2462 }
 0xc28   : > { %v2466_v29 = vmul.f32 0.0078125, %v2463_v34 }
 0xc2a   : > { %v2468_v32 = vadd.f32 1e-05, %v2466_v29 }
 0xc2b   : > { %v2465_v36 = vpop.xlane.xlu1 %2464 }
 0xc2c   : > { %3312 = vrsqrt.f32 %v2468_v32  ;;  %v2467_v45 = vmul.f32 0.0078125, %v2465_v36 }
 0xc2e   : > { %v2469_v46 = vadd.f32 1e-05, %v2467_v45 }
 0xc30   : > { %3314 = vrsqrt.f32 %v2469_v46 }
 0xc36   : > { %v3313_v47 = vpop.eup %3312 }
 0xc37   : > { %v2472_v49 = vmul.f32 %v3313_v47, %v2458_v41 }
 0xc39   : > { %v2480_v53 = vmul.f32 %v2859_v50, %v2472_v49 }
 0xc3a   : > { %v3315_v52 = vpop.eup %3314 }
 0xc3b   : > { %v2473_v54 = vmul.f32 %v3315_v52, %v2459_v44  ;;  %v2488_v58 = vadd.f32 %v2860_v55, %v2480_v53 }
 0xc3d   : > { %v2481_v57 = vmul.f32 %v2859_v50, %v2473_v54 }
 0xc3f   : > { %v2489_v60 = vadd.f32 %v2860_v55, %v2481_v57 }
 0xc41   : > { %v2875_v59 = vpack.c.bf16 %v2489_v60, %v2488_v58 }
 0xc43   : > { %2876 = vst [vmem:[%s3844_s7] sm:$0xff] %v2875_v59  }
 0xc44 PF: > { %s4264_s16 = sld [smem:[#allocation14_spill]]  ;;  %s4265_s21 = sld [smem:[#allocation10_spill]] }
 0xc45   : > { %s4266_s22 = sld [smem:[#allocation11_spill]]  ;;  %s4267_s23 = sld [smem:[#allocation17_spill]] }
 0xc46   : > { %s4268_s24 = sld [smem:[#allocation12_spill]]  ;;  %s4269_s25 = sld [smem:[#allocation13_spill]] }
 0xc47   : > { %s4270_s26 = sld [smem:[#allocation15_spill]]  ;;  %s4271_s27 = sld [smem:[#allocation16_spill]] }
 0xc4a   : > { %s32_s28 = sadd.s32 1, %s4264_s16  }
 0xc4b   : > { %p29_p4 = scmp.ge.s32.totalorder %s32_s28, 6  }
 0xc4d   :  { %31 = sbr.rel (!%p29_p4) target bundleno = 24 (0x18), region = 186 }
 0xc54   :  { %2521 = vsyncpa [#allocation4], 1 }
 0xc55   :  { %2523 = vsyncpa [#allocation4 + $0x1], 1 }
 0xc56   :  { %2524 = vsyncpa [#allocation6], 1 }
 0xc57   :  { %2526 = vsyncpa [#allocation6 + $0x1], 1 }

</bundles_post_ra>
